<compile_context>
chip_gen: v5e
topology: v5e:2x2
jax: 0.10.0
libtpu: 0.0.40
codegen_flags: <defaults>
</compile_context>

<pallas_src>
import functools

import jax
import jax.numpy as jnp
from jax.experimental import pallas as pl
from jax.experimental.pallas import tpu as pltpu

LANE = 128  # TPU lane width: last dims are padded to multiples of this.


def _round_up(x, m):
    return ((x + m - 1) // m) * m


def _fused_kernel(x_ref, drop_ref, w0_ref, b0_ref, w1_ref, b1_ref,
                  logits_ref, lse_ref,
                  h_sc, m_sc, l_sc,
                  *, vocab_size, tile_n):
    """Grid = (batch tiles, vocab tiles). Streams w1 along V, online logsumexp."""
    j = pl.program_id(1)

    # Hidden activation: computed once per batch tile (j == 0), reused for all V tiles.
    @pl.when(j == 0)
    def _():
        h = jnp.dot(x_ref[...], w0_ref[...], preferred_element_type=jnp.float32)
        h = jnp.maximum(h + b0_ref[...], 0.0)      # linear0 + ReLU  (f32)
        h = h * drop_ref[...]                      # dropout: mask pre-scaled by 1/(1-p)
        h_sc[...] = h.astype(h_sc.dtype)           # bf16 operand for the second matmul
        m_sc[...] = jnp.full_like(m_sc, -jnp.inf)  # running row max
        l_sc[...] = jnp.zeros_like(l_sc)           # running sum of exp

    # linear1 tile (H -> TN slice of V) + ReLU.
    logits = jnp.dot(h_sc[...], w1_ref[...], preferred_element_type=jnp.float32)
    logits = jnp.maximum(logits + b1_ref[...], 0.0)

    # Mask vocab-padding columns so they do not contribute to the softmax.
    col = j * tile_n + jax.lax.broadcasted_iota(jnp.int32, logits.shape, 1)
    logits = jnp.where(col < vocab_size, logits, -jnp.inf)
    logits_ref[...] = logits

    # Online logsumexp accumulation across the V tiles.
    m_prev = m_sc[...]
    m_new = jnp.maximum(m_prev, jnp.max(logits, axis=-1, keepdims=True))
    l_sc[...] = l_sc[...] * jnp.exp(m_prev - m_new) + jnp.sum(
        jnp.exp(logits - m_new), axis=-1, keepdims=True)
    m_sc[...] = m_new

    @pl.when(j == pl.num_programs(1) - 1)
    def _():
        lse = m_sc[...] + jnp.log(l_sc[...])                    # (TB, 1)
        lse_ref[...] = jnp.broadcast_to(lse, lse_ref.shape)     # lane-dense (TB, 128)


def _normalize_kernel(logits_ref, lse_ref, out_ref):
    # Second (lane-dense) pass: log_softmax = logits - logsumexp(logits).
    out_ref[...] = logits_ref[...] - lse_ref[:, 0:1]


def skipgram_forward(token_ids, params, dropout_key, *,
                     tile_b=128, tile_n=128, compute_dtype=jnp.bfloat16):
    emb, w0, b0, w1, b1 = (params["emb"], params["w0"], params["b0"],
                           params["w1"], params["b1"])
    B = token_ids.shape[0]
    E = emb.shape[1]
    H = w0.shape[1]
    V = w1.shape[1]

    Bp = _round_up(B, tile_b)
    Ep = _round_up(E, LANE)
    Hp = _round_up(H, LANE)
    Vp = _round_up(V, tile_n)

    # Embedding gather as plain-JAX glue (cheap XLA gather at these sizes).
    # TODO(synk): fuse the gather into the kernel via scalar-prefetched token ids + DMA.
    x = emb[token_ids]                                              # (B, E) f32
    x = jnp.pad(x, ((0, Bp - B), (0, Ep - E))).astype(compute_dtype)

    # Inverted-scale dropout mask, p=0.5 (F.dropout default, training=True).
    # TODO(synk): pltpu.prng_random_bits could build this on-device, but it has no
    # CPU/interpret lowering, so the mask is generated host-side for portability.
    keep = jax.random.bernoulli(dropout_key, 0.5, (Bp, Hp))
    drop_scale = keep.astype(jnp.float32) * 2.0                     # 0.0 or 1/(1-p)

    # Weights stored (in, out); zero-pad to lane multiples; matmul operands in bf16.
    w0p = jnp.pad(w0, ((0, Ep - E), (0, Hp - H))).astype(compute_dtype)
    b0p = jnp.pad(b0, ((0, 0), (0, Hp - H)))
    w1p = jnp.pad(w1, ((0, Hp - H), (0, Vp - V))).astype(compute_dtype)
    b1p = jnp.pad(b1, ((0, 0), (0, Vp - V)))

    nb, nv = Bp // tile_b, Vp // tile_n

    flops = 2 * Bp * (Ep * Hp + Hp * Vp)
    bytes_accessed = (x.size * x.dtype.itemsize + drop_scale.size * 4
                      + w0p.size * w0p.dtype.itemsize + b0p.size * 4
                      + w1p.size * w1p.dtype.itemsize + b1p.size * 4
                      + Bp * Vp * 4 + Bp * LANE * 4)

    kernel = functools.partial(_fused_kernel, vocab_size=V, tile_n=tile_n)

    logits, lse = pl.pallas_call(
        kernel,
        out_shape=(jax.ShapeDtypeStruct((Bp, Vp), jnp.float32),
                   jax.ShapeDtypeStruct((Bp, LANE), jnp.float32)),
        grid=(nb, nv),
        in_specs=[
            pl.BlockSpec((tile_b, Ep), lambda i, j: (i, 0)),   # x
            pl.BlockSpec((tile_b, Hp), lambda i, j: (i, 0)),   # dropout scale
            pl.BlockSpec((Ep, Hp), lambda i, j: (0, 0)),       # w0
            pl.BlockSpec((1, Hp), lambda i, j: (0, 0)),        # b0
            pl.BlockSpec((Hp, tile_n), lambda i, j: (0, j)),   # w1 tile (streamed over V)
            pl.BlockSpec((1, tile_n), lambda i, j: (0, j)),    # b1 tile
        ],
        out_specs=(
            pl.BlockSpec((tile_b, tile_n), lambda i, j: (i, j)),  # relu'd logits
            pl.BlockSpec((tile_b, LANE), lambda i, j: (i, 0)),    # per-row logsumexp
        ),
        scratch_shapes=[
            pltpu.VMEM((tile_b, Hp), compute_dtype),  # hidden activation (reused over V)
            pltpu.VMEM((tile_b, 1), jnp.float32),     # running max
            pltpu.VMEM((tile_b, 1), jnp.float32),     # running sum-exp
        ],
        compiler_params=pltpu.CompilerParams(
            dimension_semantics=("parallel", "arbitrary"),
            vmem_limit_bytes=32 * 1024 * 1024,
        ),
        cost_estimate=pl.CostEstimate(flops=flops, transcendentals=Bp * Vp,
                                      bytes_accessed=bytes_accessed),
    )(x, drop_scale, w0p, b0p, w1p, b1p)

    out = pl.pallas_call(
        _normalize_kernel,
        out_shape=jax.ShapeDtypeStruct((Bp, Vp), jnp.float32),
        grid=(nb, nv),
        in_specs=[
            pl.BlockSpec((tile_b, tile_n), lambda i, j: (i, j)),
            pl.BlockSpec((tile_b, LANE), lambda i, j: (i, 0)),
        ],
        out_specs=pl.BlockSpec((tile_b, tile_n), lambda i, j: (i, j)),
        compiler_params=pltpu.CompilerParams(
            dimension_semantics=("parallel", "parallel")),
    )(logits, lse)

    return out[:B, :V]


def init_params(key, vocab_size, emb_size):
    # Mirrors torch defaults: Embedding ~ N(0,1); Linear ~ U(-1/sqrt(fan_in), 1/sqrt(fan_in)).
    k_emb, k_w0, k_b0, k_w1, k_b1 = jax.random.split(key, 5)
    h = emb_size * 2
    bound0 = float(emb_size) ** -0.5
    bound1 = float(h) ** -0.5
    return {
        "emb": jax.random.normal(k_emb, (vocab_size, emb_size), dtype=jnp.float32),
        # stored transposed relative to PyTorch: (in, out)
        "w0": jax.random.uniform(k_w0, (emb_size, h), jnp.float32, -bound0, bound0),
        "b0": jax.random.uniform(k_b0, (1, h), jnp.float32, -bound0, bound0),
        "w1": jax.random.uniform(k_w1, (h, vocab_size), jnp.float32, -bound1, bound1),
        "b1": jax.random.uniform(k_b1, (1, vocab_size), jnp.float32, -bound1, bound1),
    }


if __name__ == "__main__":
    VOCAB_SIZE = 64
    EMB_SIZE = 32
    BATCH = 8

    key = jax.random.PRNGKey(0)
    k_params, k_x, k_drop = jax.random.split(key, 3)
    params = init_params(k_params, VOCAB_SIZE, EMB_SIZE)
    token_ids = jax.random.randint(k_x, (BATCH,), 0, VOCAB_SIZE, dtype=jnp.int32)

    out = skipgram_forward(token_ids, params, k_drop)
    jax.block_until_ready(out)

    assert out.shape == (BATCH, VOCAB_SIZE)
    assert bool(jnp.all(jnp.isfinite(out)))
    # log_softmax rows must exponentiate-sum to 1.
    assert bool(jnp.allclose(jnp.exp(out).sum(axis=-1), 1.0, atol=1e-3))
    print("KERNEL_OK")
</pallas_src>

<mosaic_0001>
module attributes {stable_mosaic.version = 11 : i64} {
  func.func @_fused_kernel(%arg0: i32, %arg1: i32, %arg2: memref<128x128xbf16, #tpu.memory_space<vmem>>, %arg3: memref<128x128xf32, #tpu.memory_space<vmem>>, %arg4: memref<128x128xbf16, #tpu.memory_space<vmem>>, %arg5: memref<1x128xf32, #tpu.memory_space<vmem>>, %arg6: memref<128x128xbf16, #tpu.memory_space<vmem>>, %arg7: memref<1x128xf32, #tpu.memory_space<vmem>>, %arg8: memref<128x128xf32, #tpu.memory_space<vmem>>, %arg9: memref<128x128xf32, #tpu.memory_space<vmem>>, %arg10: memref<128x128xbf16, #tpu.memory_space<vmem>>, %arg11: memref<128x1xf32, #tpu.memory_space<vmem>>, %arg12: memref<128x1xf32, #tpu.memory_space<vmem>>) attributes {dimension_semantics = [#tpu.dimension_semantics<parallel>, #tpu.dimension_semantics<arbitrary>], iteration_bounds = array<i64: 1, 1>, scalar_prefetch = 0 : i64, scratch_operands = 3 : i64, tpu.core_type = #tpu.core_type<tc>, window_params = [{transform_indices = @transform_0, window_bounds = array<i64: 128, 128>}, {transform_indices = @transform_1, window_bounds = array<i64: 128, 128>}, {pipeline_mode = #tpu.pipeline_mode<synchronous>, transform_indices = @transform_2, window_bounds = array<i64: 128, 128>}, {pipeline_mode = #tpu.pipeline_mode<synchronous>, transform_indices = @transform_3, window_bounds = array<i64: 1, 128>}, {transform_indices = @transform_4, window_bounds = array<i64: 128, 128>}, {transform_indices = @transform_5, window_bounds = array<i64: 1, 128>}, {transform_indices = @transform_6, window_bounds = array<i64: 128, 128>}, {transform_indices = @transform_7, window_bounds = array<i64: 128, 128>}]} {
    %c0_i32 = arith.constant 0 : i32
    %0 = arith.cmpi eq, %arg1, %c0_i32 : i32
    %1 = arith.extui %0 : i1 to i32
    %c0_i32_0 = arith.constant 0 : i32
    %2 = arith.cmpi ne, %1, %c0_i32_0 : i32
    scf.if %2 {
      %c0_22 = arith.constant 0 : index
      %c0_23 = arith.constant 0 : index
      %39 = vector.load %arg2[%c0_22, %c0_23] : memref<128x128xbf16, #tpu.memory_space<vmem>>, vector<128x128xbf16>
      %c0_24 = arith.constant 0 : index
      %c0_25 = arith.constant 0 : index
      %40 = vector.load %arg4[%c0_24, %c0_25] : memref<128x128xbf16, #tpu.memory_space<vmem>>, vector<128x128xbf16>
      %cst_26 = arith.constant dense<0.000000e+00> : vector<128x128xf32>
      %41 = tpu.matmul %39, %40, %cst_26 {dimension_numbers = #tpu.dot_dimension_numbers<[1], [0], [0], [1], [0, 0, 1, 1], [], []>} : vector<128x128xbf16>, vector<128x128xbf16>, vector<128x128xf32> -> vector<128x128xf32>
      %c0_27 = arith.constant 0 : index
      %c0_28 = arith.constant 0 : index
      %42 = vector.load %arg5[%c0_27, %c0_28] : memref<1x128xf32, #tpu.memory_space<vmem>>, vector<1x128xf32>
      %43 = vector.broadcast %42 : vector<1x128xf32> to vector<128x128xf32>
      %44 = arith.addf %41, %43 : vector<128x128xf32>
      %cst_29 = arith.constant 0.000000e+00 : f32
      %45 = vector.broadcast %cst_29 : f32 to vector<128x128xf32>
      %46 = arith.maximumf %44, %45 : vector<128x128xf32>
      %c0_30 = arith.constant 0 : index
      %c0_31 = arith.constant 0 : index
      %47 = vector.load %arg3[%c0_30, %c0_31] : memref<128x128xf32, #tpu.memory_space<vmem>>, vector<128x128xf32>
      %48 = arith.mulf %46, %47 : vector<128x128xf32>
      %49 = arith.truncf %48 : vector<128x128xf32> to vector<128x128xbf16>
      %c0_32 = arith.constant 0 : index
      %c0_33 = arith.constant 0 : index
      %50 = vector.load %arg10[%c0_32, %c0_33] : memref<128x128xbf16, #tpu.memory_space<vmem>>, vector<128x128xbf16>
      tpu.vector_store %arg10[%c0_32, %c0_33], %49 {strides = array<i32>} : memref<128x128xbf16, #tpu.memory_space<vmem>>, vector<128x128xbf16>,
      %cst_34 = arith.constant 0xFF800000 : f32
      %51 = vector.broadcast %cst_34 : f32 to vector<128x1xf32>
      %c0_35 = arith.constant 0 : index
      %c0_36 = arith.constant 0 : index
      %52 = vector.load %arg11[%c0_35, %c0_36] : memref<128x1xf32, #tpu.memory_space<vmem>>, vector<128x1xf32>
      tpu.vector_store %arg11[%c0_35, %c0_36], %51 {strides = array<i32>} : memref<128x1xf32, #tpu.memory_space<vmem>>, vector<128x1xf32>,
      %cst_37 = arith.constant 0.000000e+00 : f32
      %53 = vector.broadcast %cst_37 : f32 to vector<128x1xf32>
      %c0_38 = arith.constant 0 : index
      %c0_39 = arith.constant 0 : index
      %54 = vector.load %arg12[%c0_38, %c0_39] : memref<128x1xf32, #tpu.memory_space<vmem>>, vector<128x1xf32>
      tpu.vector_store %arg12[%c0_38, %c0_39], %53 {strides = array<i32>} : memref<128x1xf32, #tpu.memory_space<vmem>>, vector<128x1xf32>,
    } else {
    }
    %c0 = arith.constant 0 : index
    %c0_1 = arith.constant 0 : index
    %3 = vector.load %arg10[%c0, %c0_1] : memref<128x128xbf16, #tpu.memory_space<vmem>>, vector<128x128xbf16>
    %c0_2 = arith.constant 0 : index
    %c0_3 = arith.constant 0 : index
    %4 = vector.load %arg6[%c0_2, %c0_3] : memref<128x128xbf16, #tpu.memory_space<vmem>>, vector<128x128xbf16>
    %cst = arith.constant dense<0.000000e+00> : vector<128x128xf32>
    %5 = tpu.matmul %3, %4, %cst {dimension_numbers = #tpu.dot_dimension_numbers<[1], [0], [0], [1], [0, 0, 1, 1], [], []>} : vector<128x128xbf16>, vector<128x128xbf16>, vector<128x128xf32> -> vector<128x128xf32>
    %c0_4 = arith.constant 0 : index
    %c0_5 = arith.constant 0 : index
    %6 = vector.load %arg7[%c0_4, %c0_5] : memref<1x128xf32, #tpu.memory_space<vmem>>, vector<1x128xf32>
    %7 = vector.broadcast %6 : vector<1x128xf32> to vector<128x128xf32>
    %8 = arith.addf %5, %7 : vector<128x128xf32>
    %cst_6 = arith.constant 0.000000e+00 : f32
    %9 = vector.broadcast %cst_6 : f32 to vector<128x128xf32>
    %10 = arith.maximumf %8, %9 : vector<128x128xf32>
    %c128_i32 = arith.constant 128 : i32
    %11 = arith.muli %arg1, %c128_i32 : i32
    %12 = tpu.iota {dimensions = array<i32: 1>} : vector<128x128xi32>
    %13 = vector.broadcast %11 : i32 to vector<128x128xi32>
    %14 = arith.addi %13, %12 : vector<128x128xi32>
    %c64_i32 = arith.constant 64 : i32
    %15 = vector.broadcast %c64_i32 : i32 to vector<128x128xi32>
    %16 = arith.cmpi slt, %14, %15 : vector<128x128xi32>
    %cst_7 = arith.constant 0xFF800000 : f32
    %17 = vector.broadcast %cst_7 : f32 to vector<128x128xf32>
    %18 = arith.select %16, %10, %17 : vector<128x128xi1>, vector<128x128xf32>
    %c0_8 = arith.constant 0 : index
    %c0_9 = arith.constant 0 : index
    %19 = vector.load %arg8[%c0_8, %c0_9] : memref<128x128xf32, #tpu.memory_space<vmem>>, vector<128x128xf32>
    tpu.vector_store %arg8[%c0_8, %c0_9], %18 {strides = array<i32>} : memref<128x128xf32, #tpu.memory_space<vmem>>, vector<128x128xf32>,
    %c0_10 = arith.constant 0 : index
    %c0_11 = arith.constant 0 : index
    %20 = vector.load %arg11[%c0_10, %c0_11] : memref<128x1xf32, #tpu.memory_space<vmem>>, vector<128x1xf32>
    %cst_12 = arith.constant dense<0xFF800000> : vector<128xf32>
    %21 = vector.multi_reduction <maximumf>, %18, %cst_12 [1] : vector<128x128xf32> to vector<128xf32>
    %22 = vector.shape_cast %21 : vector<128xf32> to vector<128x1xf32>
    %23 = arith.maximumf %20, %22 : vector<128x1xf32>
    %c0_13 = arith.constant 0 : index
    %c0_14 = arith.constant 0 : index
    %24 = vector.load %arg12[%c0_13, %c0_14] : memref<128x1xf32, #tpu.memory_space<vmem>>, vector<128x1xf32>
    %25 = arith.subf %20, %23 : vector<128x1xf32>
    %26 = math.exp %25 : vector<128x1xf32>
    %27 = arith.mulf %24, %26 : vector<128x1xf32>
    %28 = vector.broadcast %23 : vector<128x1xf32> to vector<128x128xf32>
    %29 = arith.subf %18, %28 : vector<128x128xf32>
    %30 = math.exp %29 : vector<128x128xf32>
    %cst_15 = arith.constant dense<0.000000e+00> : vector<128xf32>
    %31 = vector.multi_reduction <add>, %30, %cst_15 [1] : vector<128x128xf32> to vector<128xf32>
    %32 = vector.shape_cast %31 : vector<128xf32> to vector<128x1xf32>
    %33 = arith.addf %27, %32 : vector<128x1xf32>
    %c0_16 = arith.constant 0 : index
    %c0_17 = arith.constant 0 : index
    %34 = vector.load %arg12[%c0_16, %c0_17] : memref<128x1xf32, #tpu.memory_space<vmem>>, vector<128x1xf32>
    tpu.vector_store %arg12[%c0_16, %c0_17], %33 {strides = array<i32>} : memref<128x1xf32, #tpu.memory_space<vmem>>, vector<128x1xf32>,
    %c0_18 = arith.constant 0 : index
    %c0_19 = arith.constant 0 : index
    %35 = vector.load %arg11[%c0_18, %c0_19] : memref<128x1xf32, #tpu.memory_space<vmem>>, vector<128x1xf32>
    tpu.vector_store %arg11[%c0_18, %c0_19], %23 {strides = array<i32>} : memref<128x1xf32, #tpu.memory_space<vmem>>, vector<128x1xf32>,
    %c0_i32_20 = arith.constant 0 : i32
    %36 = arith.cmpi eq, %arg1, %c0_i32_20 : i32
    %37 = arith.extui %36 : i1 to i32
    %c0_i32_21 = arith.constant 0 : i32
    %38 = arith.cmpi ne, %37, %c0_i32_21 : i32
    scf.if %38 {
      %c0_22 = arith.constant 0 : index
      %c0_23 = arith.constant 0 : index
      %39 = vector.load %arg11[%c0_22, %c0_23] : memref<128x1xf32, #tpu.memory_space<vmem>>, vector<128x1xf32>
      %c0_24 = arith.constant 0 : index
      %c0_25 = arith.constant 0 : index
      %40 = vector.load %arg12[%c0_24, %c0_25] : memref<128x1xf32, #tpu.memory_space<vmem>>, vector<128x1xf32>
      %41 = math.log %40 : vector<128x1xf32>
      %42 = arith.addf %39, %41 : vector<128x1xf32>
      %43 = vector.shape_cast %42 : vector<128x1xf32> to vector<128x1xf32>
      %44 = vector.broadcast %43 : vector<128x1xf32> to vector<128x128xf32>
      %c0_26 = arith.constant 0 : index
      %c0_27 = arith.constant 0 : index
      %45 = vector.load %arg9[%c0_26, %c0_27] : memref<128x128xf32, #tpu.memory_space<vmem>>, vector<128x128xf32>
      tpu.vector_store %arg9[%c0_26, %c0_27], %44 {strides = array<i32>} : memref<128x128xf32, #tpu.memory_space<vmem>>, vector<128x128xf32>,
    } else {
    }
    return
  }
  func.func @transform_0(%arg0: i32, %arg1: i32) -> (i32, i32) {
    %c0_i32 = arith.constant 0 : i32
    %c0_i32_0 = arith.constant 0 : i32
    return %arg0, %c0_i32 : i32, i32
  }
  func.func @transform_1(%arg0: i32, %arg1: i32) -> (i32, i32) {
    %c0_i32 = arith.constant 0 : i32
    %c0_i32_0 = arith.constant 0 : i32
    return %arg0, %c0_i32 : i32, i32
  }
  func.func @transform_2(%arg0: i32, %arg1: i32) -> (i32, i32) {
    %c0_i32 = arith.constant 0 : i32
    %c0_i32_0 = arith.constant 0 : i32
    %c0_i32_1 = arith.constant 0 : i32
    return %c0_i32, %c0_i32_0 : i32, i32
  }
  func.func @transform_3(%arg0: i32, %arg1: i32) -> (i32, i32) {
    %c0_i32 = arith.constant 0 : i32
    %c0_i32_0 = arith.constant 0 : i32
    %c0_i32_1 = arith.constant 0 : i32
    return %c0_i32, %c0_i32_0 : i32, i32
  }
  func.func @transform_4(%arg0: i32, %arg1: i32) -> (i32, i32) {
    %c0_i32 = arith.constant 0 : i32
    %c0_i32_0 = arith.constant 0 : i32
    return %c0_i32, %arg1 : i32, i32
  }
  func.func @transform_5(%arg0: i32, %arg1: i32) -> (i32, i32) {
    %c0_i32 = arith.constant 0 : i32
    %c0_i32_0 = arith.constant 0 : i32
    return %c0_i32, %arg1 : i32, i32
  }
  func.func @transform_6(%arg0: i32, %arg1: i32) -> (i32, i32) {
    %c0_i32 = arith.constant 0 : i32
    return %arg0, %arg1 : i32, i32
  }
  func.func @transform_7(%arg0: i32, %arg1: i32) -> (i32, i32) {
    %c0_i32 = arith.constant 0 : i32
    %c0_i32_0 = arith.constant 0 : i32
    return %arg0, %c0_i32 : i32, i32
  }
}

</mosaic_0001>

<bundles_post_ra>
// kernel: tpu_custom_call.1
= control target key start
LH: loop header
LB: loop body
LE: loop exit
PB: predicated region body
PF: predicated region fallthrough
CT: control target
= control target key end

     0   :  { %13 = vsyncpa [#allocation6], 0  ;;  %s2178_s0 = inlined_call_operand.hbm [shape: bf16[128,128], index: 0, kind: input, shape index: {}]   ;;  %s2179_s1 = inlined_call_operand.hbm [shape: f32[128,128], index: 1, kind: input, shape index: {}]   ;;  %s2180_s2 = inlined_call_operand.hbm [shape: bf16[128,128], index: 2, kind: input, shape index: {}]   ;;  %s2181_s3 = inlined_call_operand.vmem [shape: f32[1,128], index: 3, kind: input, shape index: {}]   ;;  %s2182_s4 = inlined_call_operand.hbm [shape: bf16[128,128], index: 4, kind: input, shape index: {}]   ;;  %s2183_s5 = inlined_call_operand.vmem [shape: f32[1,128], index: 5, kind: input, shape index: {}]   ;;  %s2184_s6 = inlined_call_operand.hbm [shape: f32[128,128], index: 6, kind: output, shape index: {0}]   ;;  %s2185_s7 = inlined_call_operand.hbm [shape: f32[128,128], index: 7, kind: output, shape index: {1}]  }
   0x1   :  { %14 = vsyncpa [#allocation9], 0 }
   0x2   :  { %15 = vsyncpa [#allocation12], 0 }
   0x3   :  { %16 = vsyncpa [#allocation7], 0  ;;  %s35_s26 = sshll.u32 %s2179_s1, 4  ;;  %s36_s26 = int_to_ptr.hbm [resolvable:$true] %s35_s26 }
   0x4   :  { %17 = vsyncpa [#allocation15], 0  ;;  %s1685_s27 = smov [#allocation8]   ;;  %s22_s8 = sshll.u32 %s2178_s0, 4  ;;  %s23_s8 = int_to_ptr.hbm [resolvable:$true] %s22_s8 }
   0x5   :  { %s37_s28 = sshll.u32 %s1685_s27, 4  ;;  %s1686_s9 = smov 128   ;;  %s38_s28 = int_to_ptr.vmem [resolvable:$true] %s37_s28 }
   0x6   :  { %s1687_s10 = smov 8   ;;  %s1688_s11 = smov [#allocation5]  }
   0x7   :  { %43 = dma.hbm_to_vmem [thread:$0]  %s36_s26, 2048, %s38_s28, [#allocation9], %s1686_s9, %s1686_s9, %s1687_s10  }
   0x8   :  { %s24_s12 = sshll.u32 %s1688_s11, 4  ;;  %s1689_s1 = smov 64   ;;  %s25_s12 = int_to_ptr.vmem [resolvable:$true] %s24_s12 }
   0x9   :  { %s1690_s13 = smov 4   ;;  %s48_s16 = sshll.u32 %s2180_s2, 4  ;;  %s49_s16 = int_to_ptr.hbm [resolvable:$true] %s48_s16 }
   0xa   :  { %30 = dma.hbm_to_vmem [thread:$0]  %s23_s8, 1024, %s25_s12, [#allocation6], %s1689_s1, %s1689_s1, %s1690_s13  }
   0xb   :  { %s1691_s17 = smov [#allocation10]   ;;  %s63_s20 = sshll.u32 %s2182_s4, 4  ;;  %s64_s20 = int_to_ptr.hbm [resolvable:$true] %s63_s20 }
   0xc   :  { %s50_s0 = sshll.u32 %s1691_s17, 4  ;;  %s1692_s21 = smov [#allocation11]   ;;  %s51_s0 = int_to_ptr.vmem [resolvable:$true] %s50_s0 }
   0xd   :  { %56 = dma.hbm_to_vmem [thread:$0]  %s49_s16, 1024, %s51_s0, [#allocation9], %s1689_s1, %s1689_s1, %s1690_s13  }
   0xe   :  { %s65_s22 = sshll.u32 %s1692_s21, 4  ;;  %s66_s22 = int_to_ptr.vmem [resolvable:$true] %s65_s22 }
   0xf   :  { %71 = dma.hbm_to_vmem [thread:$0]  %s64_s20, 1024, %s66_s22, [#allocation12], %s1689_s1, %s1689_s1, %s1690_s13  }
  0x10   :  { %1675 = dma.done.wait [#allocation6], 1024  }
  0x11   :  { %1676 = vsyncadd [#allocation6], 4294966272 }
  0x12   :  { %1677 = dma.done.wait [#allocation9], 3072  }
  0x13   :  { %1678 = vsyncadd [#allocation9], 4294964224 }
  0x14   :  { %1679 = dma.done.wait [#allocation12], 1024  }
  0x15   :  { %1680 = vsyncadd [#allocation12], 4294966272  ;;  %v1337_v0 = vld [vmem:[#allocation10 + $0x38] sm:$0xff]  ;;  %v1336_v1 = vld [vmem:[#allocation10 + $0x30] sm:$0xff]  ;;  %vm355_vm1 = vcmask 7168   ;;  %s1161_s25 = sshll.u32 %s2184_s6, 4  ;;  %s1162_s25 = int_to_ptr.hbm [resolvable:$true] %s1161_s25 }
  0x16   :  { %226 = vmatpush.bf16.msra.mxu0 %v1337_v0  ;;  %1401 = vmatpush.bf16.msra.mxu2 %v1337_v0  ;;  %v1335_v2 = vld [vmem:[#allocation10 + $0x28] sm:$0xff]  ;;  %v1334_v3 = vld [vmem:[#allocation10 + $0x20] sm:$0xff]  ;;  %v1333_v4 = vld [vmem:[#allocation10 + $0x18] sm:$0xff]  ;;  %s1696_s26 = smov [#allocation13]   ;;  %s1697_s6 = smov [#allocation14]  }
  0x17   :  { %v1332_v5 = vld [vmem:[#allocation10 + $0x10] sm:$0xff]  ;;  %v1331_v6 = vld [vmem:[#allocation10 + $0x8] sm:$0xff]  ;;  %v1330_v7 = vld [vmem:[#allocation10] sm:$0xff]  ;;  %s1159_s27 = sshll.u32 %s1696_s26, 4  ;;  %s1172_s28 = sshll.u32 %s1697_s6, 4  ;;  %s1160_s27 = int_to_ptr.vmem [resolvable:$true] %s1159_s27  ;;  %s1173_s28 = int_to_ptr.vmem [resolvable:$true] %s1172_s28 }
  0x18   :  { %v1322_v8 = vld [vmem:[#allocation5] sm:$0xff]  ;;  %v1323_v10 = vld [vmem:[#allocation5 + $0x8] sm:$0xff]  ;;  %v1353_v12 = vld [vmem:[#allocation11 + $0x38] sm:$0xff]  ;;  %s1174_s8 = sshll.u32 %s2185_s7, 4  ;;  %s1175_s8 = int_to_ptr.hbm [resolvable:$true] %s1174_s8 }
  0x19   :  { %v1326_v9 = vld [vmem:[#allocation5 + $0x20] sm:$0xff]  ;;  %v1327_v11 = vld [vmem:[#allocation5 + $0x28] sm:$0xff]  ;;  %520 = vmatpush.bf16.msra.mxu1 %v1353_v12  ;;  %1409 = vmatpush.bf16.msra.mxu3 %v1353_v12  ;;  %v1324_v13 = vld [vmem:[#allocation5 + $0x10] sm:$0xff] }
  0x1a   :  { %227 = vmatpush.bf16.msra.mxu0 %v1336_v1  ;;  %1402 = vmatpush.bf16.msra.mxu2 %v1336_v1  ;;  %v1328_v14 = vld [vmem:[#allocation5 + $0x30] sm:$0xff]  ;;  %v1325_v15 = vld [vmem:[#allocation5 + $0x18] sm:$0xff]  ;;  %v1351_v18 = vld [vmem:[#allocation11 + $0x28] sm:$0xff] }
  0x1b   :  { %v1329_v16 = vld [vmem:[#allocation5 + $0x38] sm:$0xff]  ;;  %v1352_v17 = vld [vmem:[#allocation11 + $0x30] sm:$0xff]  ;;  %v1350_v19 = vld [vmem:[#allocation11 + $0x20] sm:$0xff] }
  0x1c   :  { %v1349_v20 = vld [vmem:[#allocation11 + $0x18] sm:$0xff]  ;;  %v1348_v21 = vld [vmem:[#allocation11 + $0x10] sm:$0xff]  ;;  %v1347_v22 = vld [vmem:[#allocation11 + $0x8] sm:$0xff] }
  0x1d   :  { %521 = vmatpush.bf16.msra.mxu1 %v1352_v17  ;;  %1410 = vmatpush.bf16.msra.mxu3 %v1352_v17  ;;  %v1346_v23 = vld [vmem:[#allocation11] sm:$0xff]  ;;  %v292_v32 = vld [vmem:[#allocation8 + $0x8] sm:$0xff]  ;;  %v293_v51 = vld [vmem:[#allocation8 + $0x10] sm:$0xff] }
  0x1e   :  { %228 = vmatpush.bf16.msra.mxu0 %v1335_v2  ;;  %1403 = vmatpush.bf16.msra.mxu2 %v1335_v2  ;;  %v1756_v25 = vld [vmem:[%s2181_s3] ss:$0 sm:$0xff]  ;;  %v300_v42 = vld [vmem:[#allocation8 + $0x48] sm:$0xff]  ;;  %v294_v55 = vld [vmem:[#allocation8 + $0x18] sm:$0xff] }
  0x1f   :  { %v291_v29 = vld [vmem:[#allocation8] sm:$0xff]  ;;  %v301_v1 = vld [vmem:[#allocation8 + $0x50] sm:$0xff]  ;;  %v302_v2 = vld [vmem:[#allocation8 + $0x58] sm:$0xff] }
  0x20   :  { %v299_v41 = vld [vmem:[#allocation8 + $0x40] sm:$0xff] }
  0x21   :  { %522 = vmatpush.bf16.msra.mxu1 %v1351_v18  ;;  %1411 = vmatpush.bf16.msra.mxu3 %v1351_v18 }
  0x22   :  { %229 = vmatpush.bf16.msra.mxu0 %v1334_v3  ;;  %1404 = vmatpush.bf16.msra.mxu2 %v1334_v3 }
  0x25   :  { %523 = vmatpush.bf16.msra.mxu1 %v1350_v19  ;;  %1412 = vmatpush.bf16.msra.mxu3 %v1350_v19 }
  0x26   :  { %230 = vmatpush.bf16.msra.mxu0 %v1333_v4  ;;  %1405 = vmatpush.bf16.msra.mxu2 %v1333_v4 }
  0x29   :  { %524 = vmatpush.bf16.msra.mxu1 %v1349_v20  ;;  %1413 = vmatpush.bf16.msra.mxu3 %v1349_v20 }
  0x2a   :  { %231 = vmatpush.bf16.msra.mxu0 %v1332_v5  ;;  %1406 = vmatpush.bf16.msra.mxu2 %v1332_v5 }
  0x2d   :  { %525 = vmatpush.bf16.msra.mxu1 %v1348_v21  ;;  %1414 = vmatpush.bf16.msra.mxu3 %v1348_v21 }
  0x2e   :  { %232 = vmatpush.bf16.msra.mxu0 %v1331_v6  ;;  %1407 = vmatpush.bf16.msra.mxu2 %v1331_v6 }
  0x31   :  { %526 = vmatpush.bf16.msra.mxu1 %v1347_v22  ;;  %1415 = vmatpush.bf16.msra.mxu3 %v1347_v22 }
  0x32   :  { %233 = vmatpush.bf16.msra.mxu0 %v1330_v7  ;;  %1408 = vmatpush.bf16.msra.mxu2 %v1330_v7 }
  0x35   :  { %234 = vmatmul.bf16.vlgmr.msra.gmra.mxu0 %v1322_v8  ;;  %254 = vmatmul.bf16.vlgmr.msra.gmra.mxu2 %v1326_v9 }
  0x36   :  { %527 = vmatpush.bf16.msra.mxu1 %v1346_v23  ;;  %1416 = vmatpush.bf16.msra.mxu3 %v1346_v23 }
  0x45   :  { %239 = vmatmul.bf16.gmra.mxu0 %v1323_v10  ;;  %259 = vmatmul.bf16.gmra.mxu2 %v1327_v11  ;;  %v295_v11 = vld [vmem:[#allocation8 + $0x20] sm:$0xff] }
  0x55   :  { %244 = vmatmul.bf16.gmra.mxu0 %v1324_v13  ;;  %264 = vmatmul.bf16.gmra.mxu2 %v1328_v14 }
  0x65   :  { %249 = vmatmul.bf16.gmra.mxu0 %v1325_v15  ;;  %269 = vmatmul.bf16.gmra.mxu2 %v1329_v16  ;;  %v296_v15 = vld [vmem:[#allocation8 + $0x28] sm:$0xff] }
  0xb2   :  { %v235_v24 = vpop.f32.mrf.mxu0 }
  0xb3   :  { %v236_v26 = vadd.f32 %v1756_v25, %v235_v24 }
  0xb5   :  { %v275_v28 = vmax.f32 %v236_v26, 0.0  ;;  %v303_v26 = vld [vmem:[#allocation8 + $0x60] sm:$0xff] }
  0xb7   :  { %v307_v33 = vmul.f32 %v291_v29, %v275_v28 }
  0xb8   :  { %v255_v27 = vpop.f32.mrf.mxu2 }
  0xb9   :  { %v256_v34 = vadd.f32 %v1756_v25, %v255_v27  ;;  %v304_v27 = vld [vmem:[#allocation8 + $0x68] sm:$0xff] }
  0xba   :  { %v237_v30 = vpop.f32.mrf.mxu0 }
  0xbb   :  { %v238_v31 = vadd.f32 %v1756_v25, %v237_v30  ;;  %v283_v38 = vmax.f32 %v256_v34, 0.0 }
  0xbd   :  { %v276_v35 = vmax.f32 %v238_v31, 0.0  ;;  %v315_v45 = vmul.f32 %v299_v41, %v283_v38 }
  0xbf   :  { %v308_v36 = vmul.f32 %v292_v32, %v276_v35 }
  0xc0   :  { %v257_v37 = vpop.f32.mrf.mxu2 }
  0xc1   :  { %v1357_v39 = vpack.c.bf16 %v308_v36, %v307_v33  ;;  %v258_v40 = vadd.f32 %v1756_v25, %v257_v37  ;;  %v297_v36 = vld [vmem:[#allocation8 + $0x30] sm:$0xff] }
  0xc2   :  { %v240_v43 = vpop.f32.mrf.mxu0 }
  0xc3   :  { %1358 = vst [vmem:[#allocation2 + $0x30] sm:$0xff] %v1357_v39   ;;  %v284_v44 = vmax.f32 %v258_v40, 0.0  ;;  %v241_v47 = vadd.f32 %v1756_v25, %v240_v43  ;;  %v298_v40 = vld [vmem:[#allocation8 + $0x38] sm:$0xff] }
  0xc5   :  { %v316_v46 = vmul.f32 %v300_v42, %v284_v44  ;;  %v277_v50 = vmax.f32 %v241_v47, 0.0 }
  0xc7   :  { %v1377_v48 = vpack.c.bf16 %v316_v46, %v315_v45  ;;  %v309_v56 = vmul.f32 %v293_v51, %v277_v50  ;;  %v305_v50 = vld [vmem:[#allocation8 + $0x70] sm:$0xff]  ;;  %v306_v51 = vld [vmem:[#allocation8 + $0x78] sm:$0xff] }
  0xc8   :  { %v260_v49 = vpop.f32.mrf.mxu2 }
  0xc9   :  { %1397 = vst [vmem:[#allocation2 + $0x8] sm:$0xff] %v1377_v48   ;;  %v261_v57 = vadd.f32 %v1756_v25, %v260_v49 }
  0xca   :  { %v242_v52 = vpop.f32.mrf.mxu0  ;;  %v1338_v53 = vld [vmem:[#allocation2 + $0x30] sm:$0xff] }
  0xcb   :  { %v243_v54 = vadd.f32 %v1756_v25, %v242_v52  ;;  %528 = vmatmul.bf16.vlgmr.msra.gmra.mxu1 %v1338_v53  ;;  %v285_v62 = vmax.f32 %v261_v57, 0.0 }
  0xcd   :  { %v278_v58 = vmax.f32 %v243_v54, 0.0  ;;  %v317_v5 = vmul.f32 %v301_v1, %v285_v62 }
  0xcf   :  { %v310_v59 = vmul.f32 %v294_v55, %v278_v58  ;;  %v586_v58 = vlaneseq }
  0xd0   :  { %v262_v60 = vpop.f32.mrf.mxu2  ;;  %v1342_v61 = vld [vmem:[#allocation2 + $0x8] sm:$0xff] }
  0xd1   :  { %v1362_v63 = vpack.c.bf16 %v310_v59, %v309_v56  ;;  %v263_v0 = vadd.f32 %v1756_v25, %v262_v60  ;;  %548 = vmatmul.bf16.vlgmr.msra.gmra.mxu3 %v1342_v61  ;;  %v1777_v59 = vld [vmem:[%s2183_s5] ss:$0 sm:$0xff] }
  0xd2   :  { %v245_v3 = vpop.f32.mrf.mxu0 }
  0xd3   :  { %1394 = vst [vmem:[#allocation2] sm:$0xff] %v1362_v63   ;;  %v286_v4 = vmax.f32 %v263_v0, 0.0  ;;  %v246_v7 = vadd.f32 %v1756_v25, %v245_v3 }
  0xd5   :  { %v318_v6 = vmul.f32 %v302_v2, %v286_v4  ;;  %v279_v10 = vmax.f32 %v246_v7, 0.0 }
  0xd7   :  { %v1382_v8 = vpack.c.bf16 %v318_v6, %v317_v5  ;;  %v311_v16 = vmul.f32 %v295_v11, %v279_v10 }
  0xd8   :  { %v265_v9 = vpop.f32.mrf.mxu2 }
  0xd9   :  { %1398 = vst [vmem:[#allocation2 + $0x20] sm:$0xff] %v1382_v8   ;;  %v266_v17 = vadd.f32 %v1756_v25, %v265_v9 }
  0xda   :  { %v247_v12 = vpop.f32.mrf.mxu0  ;;  %v1339_v13 = vld [vmem:[#allocation2] sm:$0xff] }
  0xdb   :  { %v248_v14 = vadd.f32 %v1756_v25, %v247_v12  ;;  %533 = vmatmul.bf16.gmra.mxu1 %v1339_v13  ;;  %v287_v22 = vmax.f32 %v266_v17, 0.0 }
  0xdd   :  { %v280_v18 = vmax.f32 %v248_v14, 0.0  ;;  %v319_v30 = vmul.f32 %v303_v26, %v287_v22 }
  0xdf   :  { %v312_v19 = vmul.f32 %v296_v15, %v280_v18 }
  0xe0   :  { %v267_v20 = vpop.f32.mrf.mxu2  ;;  %v1343_v21 = vld [vmem:[#allocation2 + $0x20] sm:$0xff] }
  0xe1   :  { %v1367_v23 = vpack.c.bf16 %v312_v19, %v311_v16  ;;  %v268_v24 = vadd.f32 %v1756_v25, %v267_v20  ;;  %553 = vmatmul.bf16.gmra.mxu3 %v1343_v21 }
  0xe2   :  { %v250_v28 = vpop.f32.mrf.mxu0 }
  0xe3   :  { %1395 = vst [vmem:[#allocation2 + $0x18] sm:$0xff] %v1367_v23   ;;  %v288_v29 = vmax.f32 %v268_v24, 0.0  ;;  %v251_v32 = vadd.f32 %v1756_v25, %v250_v28 }
  0xe5   :  { %v320_v31 = vmul.f32 %v304_v27, %v288_v29  ;;  %v281_v35 = vmax.f32 %v251_v32, 0.0 }
  0xe7   :  { %v1387_v33 = vpack.c.bf16 %v320_v31, %v319_v30  ;;  %v313_v41 = vmul.f32 %v297_v36, %v281_v35  ;;  %v1693_v36 = vmov -inf  }
  0xe8   :  { %v270_v34 = vpop.f32.mrf.mxu2  ;;  %356 = vst.msk [vmem:[#allocation3] sm:$0xff] %vm355_vm1, %v1693_v36 }
  0xe9   :  { %1399 = vst [vmem:[#allocation2 + $0x28] sm:$0xff] %v1387_v33   ;;  %v271_v42 = vadd.f32 %v1756_v25, %v270_v34 }
  0xea   :  { %v252_v37 = vpop.f32.mrf.mxu0  ;;  %v1340_v38 = vld [vmem:[#allocation2 + $0x18] sm:$0xff]  ;;  %357 = vst.msk [vmem:[#allocation3 + $0x8] sm:$0xff] %vm355_vm1, %v1693_v36 }
  0xeb   :  { %v253_v39 = vadd.f32 %v1756_v25, %v252_v37  ;;  %538 = vmatmul.bf16.gmra.mxu1 %v1340_v38  ;;  %v289_v47 = vmax.f32 %v271_v42, 0.0  ;;  %358 = vst.msk [vmem:[#allocation3 + $0x10] sm:$0xff] %vm355_vm1, %v1693_v36 }
  0xec   :  { %359 = vst.msk [vmem:[#allocation3 + $0x18] sm:$0xff] %vm355_vm1, %v1693_v36 }
  0xed   :  { %v282_v43 = vmax.f32 %v253_v39, 0.0  ;;  %v321_v53 = vmul.f32 %v305_v50, %v289_v47  ;;  %360 = vst.msk [vmem:[#allocation3 + $0x20] sm:$0xff] %vm355_vm1, %v1693_v36 }
  0xee   :  { %361 = vst.msk [vmem:[#allocation3 + $0x28] sm:$0xff] %vm355_vm1, %v1693_v36 }
  0xef   :  { %v314_v44 = vmul.f32 %v298_v40, %v282_v43  ;;  %362 = vst.msk [vmem:[#allocation3 + $0x30] sm:$0xff] %vm355_vm1, %v1693_v36 }
  0xf0   :  { %v272_v45 = vpop.f32.mrf.mxu2  ;;  %v1344_v46 = vld [vmem:[#allocation2 + $0x28] sm:$0xff]  ;;  %363 = vst.msk [vmem:[#allocation3 + $0x38] sm:$0xff] %vm355_vm1, %v1693_v36 }
  0xf1   :  { %v1372_v48 = vpack.c.bf16 %v314_v44, %v313_v41  ;;  %v273_v49 = vadd.f32 %v1756_v25, %v272_v45  ;;  %558 = vmatmul.bf16.gmra.mxu3 %v1344_v46  ;;  %v1779_v25 = vand.u32 127, %v586_v58  ;;  %364 = vst.msk [vmem:[#allocation3 + $0x40] sm:$0xff] %vm355_vm1, %v1693_v36 }
  0xf2   :  { %365 = vst.msk [vmem:[#allocation3 + $0x48] sm:$0xff] %vm355_vm1, %v1693_v36 }
  0xf3   :  { %1396 = vst [vmem:[#allocation2 + $0x10] sm:$0xff] %v1372_v48   ;;  %v290_v52 = vmax.f32 %v273_v49, 0.0  ;;  %vm590_vm0 = vcmp.lt.s32.totalorder %v1779_v25, 64 }
  0xf4   :  { %366 = vst.msk [vmem:[#allocation3 + $0x50] sm:$0xff] %vm355_vm1, %v1693_v36 }
  0xf5   :  { %v322_v54 = vmul.f32 %v306_v51, %v290_v52  ;;  %367 = vst.msk [vmem:[#allocation3 + $0x58] sm:$0xff] %vm355_vm1, %v1693_v36 }
  0xf6   :  { %368 = vst.msk [vmem:[#allocation3 + $0x60] sm:$0xff] %vm355_vm1, %v1693_v36 }
  0xf7   :  { %v1392_v55 = vpack.c.bf16 %v322_v54, %v321_v53  ;;  %369 = vst.msk [vmem:[#allocation3 + $0x68] sm:$0xff] %vm355_vm1, %v1693_v36 }
  0xf8   :  { %370 = vst.msk [vmem:[#allocation3 + $0x70] sm:$0xff] %vm355_vm1, %v1693_v36 }
  0xf9   :  { %1400 = vst [vmem:[#allocation2 + $0x38] sm:$0xff] %v1392_v55  }
  0xfa   :  { %v1341_v56 = vld [vmem:[#allocation2 + $0x10] sm:$0xff]  ;;  %371 = vst.msk [vmem:[#allocation3 + $0x78] sm:$0xff] %vm355_vm1, %v1693_v36 }
  0xfb   :  { %543 = vmatmul.bf16.gmra.mxu1 %v1341_v56 }
 0x100   :  { %v1345_v57 = vld [vmem:[#allocation2 + $0x38] sm:$0xff] }
 0x101   :  { %563 = vmatmul.bf16.gmra.mxu3 %v1345_v57 }
 0x148   :  { %v529_v60 = vpop.f32.mrf.mxu1 }
 0x149   :  { %v530_v61 = vadd.f32 %v1777_v59, %v529_v60 }
 0x14b   :  { %v569_v62 = vmax.f32 %v530_v61, 0.0 }
 0x14d   :  { %v1785_v63 = vsel %vm590_vm0, %v569_v62, -inf }
 0x14e   :  { %639 = vmax.xlane.f32.xlu0 %v1785_v63  ;;  %607 = vst [vmem:[#allocation13] sm:$0xff] %v1785_v63 }
 0x150   :  { %v531_v0 = vpop.f32.mrf.mxu1 }
 0x151   :  { %v532_v1 = vadd.f32 %v1777_v59, %v531_v0  ;;  %v1694_v0 = vmov 0  }
 0x152   :  { %1430 = vset.pattern.permute.xlu1 %v1694_v0  ;;  %1431 = vset.pattern.permute.xlu2 %v1694_v0 }
 0x153   :  { %v570_v2 = vmax.f32 %v532_v1, 0.0  ;;  %1432 = vset.pattern.permute.xlu0 %v1694_v0  ;;  %v1695_v1 = vmov 0.0  }
 0x154   :  { %v549_v3 = vpop.f32.mrf.mxu3  ;;  %373 = vst.msk [vmem:[#allocation4 + $0x8] sm:$0xff] %vm355_vm1, %v1695_v1 }
 0x155   :  { %v550_v4 = vadd.f32 %v1777_v59, %v549_v3  ;;  %v1793_v5 = vsel %vm590_vm0, %v570_v2, -inf  ;;  %372 = vst.msk [vmem:[#allocation4] sm:$0xff] %vm355_vm1, %v1695_v1 }
 0x156   :  { %608 = vst [vmem:[#allocation13 + $0x8] sm:$0xff] %v1793_v5  ;;  %641 = vmax.xlane.f32.xlu0 %v1793_v5 }
 0x157   :  { %v577_v6 = vmax.f32 %v550_v4, 0.0  ;;  %374 = vst.msk [vmem:[#allocation4 + $0x10] sm:$0xff] %vm355_vm1, %v1695_v1  ;;  %v1936_v4 = vld [vmem:[#allocation3 + $0x8] sm:$0xff] }
 0x158   :  { %v534_v7 = vpop.f32.mrf.mxu1  ;;  %375 = vst.msk [vmem:[#allocation4 + $0x18] sm:$0xff] %vm355_vm1, %v1695_v1 }
 0x159   :  { %v535_v8 = vadd.f32 %v1777_v59, %v534_v7  ;;  %v1800_v9 = vsel %vm590_vm0, %v577_v6, -inf  ;;  %376 = vst.msk [vmem:[#allocation4 + $0x20] sm:$0xff] %vm355_vm1, %v1695_v1 }
 0x15a   :  { %655 = vmax.xlane.f32.xlu2 %v1800_v9  ;;  %615 = vst [vmem:[#allocation13 + $0x40] sm:$0xff] %v1800_v9 }
 0x15b   :  { %v571_v10 = vmax.f32 %v535_v8, 0.0  ;;  %377 = vst.msk [vmem:[#allocation4 + $0x28] sm:$0xff] %vm355_vm1, %v1695_v1  ;;  %v1941_v8 = vld [vmem:[#allocation3 + $0x40] sm:$0xff] }
 0x15c   :  { %v551_v11 = vpop.f32.mrf.mxu3  ;;  %378 = vst.msk [vmem:[#allocation4 + $0x30] sm:$0xff] %vm355_vm1, %v1695_v1 }
 0x15d   :  { %v552_v12 = vadd.f32 %v1777_v59, %v551_v11  ;;  %v1807_v13 = vsel %vm590_vm0, %v571_v10, -inf  ;;  %379 = vst.msk [vmem:[#allocation4 + $0x38] sm:$0xff] %vm355_vm1, %v1695_v1 }
 0x15e   :  { %643 = vmax.xlane.f32.xlu1 %v1807_v13  ;;  %609 = vst [vmem:[#allocation13 + $0x10] sm:$0xff] %v1807_v13 }
 0x15f   :  { %v578_v14 = vmax.f32 %v552_v12, 0.0  ;;  %380 = vst.msk [vmem:[#allocation4 + $0x40] sm:$0xff] %vm355_vm1, %v1695_v1 }
 0x160   :  { %v536_v15 = vpop.f32.mrf.mxu1  ;;  %381 = vst.msk [vmem:[#allocation4 + $0x48] sm:$0xff] %vm355_vm1, %v1695_v1 }
 0x161   :  { %v537_v16 = vadd.f32 %v1777_v59, %v536_v15  ;;  %v1814_v17 = vsel %vm590_vm0, %v578_v14, -inf  ;;  %382 = vst.msk [vmem:[#allocation4 + $0x50] sm:$0xff] %vm355_vm1, %v1695_v1  ;;  %v1951_v14 = vld [vmem:[#allocation3 + $0x10] sm:$0xff] }
 0x162   :  { %616 = vst [vmem:[#allocation13 + $0x48] sm:$0xff] %v1814_v17  ;;  %657 = vmax.xlane.f32.xlu0 %v1814_v17 }
 0x163   :  { %v572_v18 = vmax.f32 %v537_v16, 0.0  ;;  %383 = vst.msk [vmem:[#allocation4 + $0x58] sm:$0xff] %vm355_vm1, %v1695_v1 }
 0x164   :  { %v554_v19 = vpop.f32.mrf.mxu3  ;;  %384 = vst.msk [vmem:[#allocation4 + $0x60] sm:$0xff] %vm355_vm1, %v1695_v1 }
 0x165   :  { %v555_v20 = vadd.f32 %v1777_v59, %v554_v19  ;;  %v1821_v21 = vsel %vm590_vm0, %v572_v18, -inf  ;;  %385 = vst.msk [vmem:[#allocation4 + $0x68] sm:$0xff] %vm355_vm1, %v1695_v1  ;;  %v1961_v19 = vld [vmem:[#allocation3 + $0x48] sm:$0xff] }
 0x166   :  { %610 = vst [vmem:[#allocation13 + $0x18] sm:$0xff] %v1821_v21  ;;  %645 = vmax.xlane.f32.xlu1 %v1821_v21 }
 0x167   :  { %v579_v22 = vmax.f32 %v555_v20, 0.0  ;;  %386 = vst.msk [vmem:[#allocation4 + $0x70] sm:$0xff] %vm355_vm1, %v1695_v1 }
 0x168   :  { %v539_v23 = vpop.f32.mrf.mxu1  ;;  %387 = vst.msk [vmem:[#allocation4 + $0x78] sm:$0xff] %vm355_vm1, %v1695_v1 }
 0x169   :  { %v540_v24 = vadd.f32 %v1777_v59, %v539_v23  ;;  %v1828_v26 = vsel %vm590_vm0, %v579_v22, -inf }
 0x16a   :  { %617 = vst [vmem:[#allocation13 + $0x50] sm:$0xff] %v1828_v26 }
 0x16b   :  { %v573_v27 = vmax.f32 %v540_v24, 0.0  ;;  %v1971_v24 = vld [vmem:[#allocation3 + $0x18] sm:$0xff] }
 0x16c   :  { %v556_v28 = vpop.f32.mrf.mxu3 }
 0x16d   :  { %v557_v29 = vadd.f32 %v1777_v59, %v556_v28  ;;  %v1834_v30 = vsel %vm590_vm0, %v573_v27, -inf }
 0x16e   :  { %647 = vmax.xlane.f32.xlu2 %v1834_v30  ;;  %611 = vst [vmem:[#allocation13 + $0x20] sm:$0xff] %v1834_v30  ;;  %659 = vmax.xlane.f32.xlu1 %v1828_v26 }
 0x16f   :  { %v580_v31 = vmax.f32 %v557_v29, 0.0 }
 0x170   :  { %v541_v32 = vpop.f32.mrf.mxu1 }
 0x171   :  { %v542_v33 = vadd.f32 %v1777_v59, %v541_v32  ;;  %v1842_v34 = vsel %vm590_vm0, %v580_v31, -inf  ;;  %v1986_v32 = vld [vmem:[#allocation3 + $0x20] sm:$0xff] }
 0x172   :  { %618 = vst [vmem:[#allocation13 + $0x58] sm:$0xff] %v1842_v34 }
 0x173   :  { %v574_v35 = vmax.f32 %v542_v33, 0.0  ;;  %v1988_v33 = vld [vmem:[#allocation3 + $0x50] sm:$0xff] }
 0x174   :  { %v559_v37 = vpop.f32.mrf.mxu3 }
 0x175   :  { %v560_v38 = vadd.f32 %v1777_v59, %v559_v37  ;;  %v1850_v39 = vsel %vm590_vm0, %v574_v35, -inf }
 0x176   :  { %661 = vmax.xlane.f32.xlu2 %v1842_v34  ;;  %612 = vst [vmem:[#allocation13 + $0x28] sm:$0xff] %v1850_v39 }
 0x177   :  { %v581_v40 = vmax.f32 %v560_v38, 0.0 }
 0x178   :  { %v544_v41 = vpop.f32.mrf.mxu1 }
 0x179   :  { %v545_v42 = vadd.f32 %v1777_v59, %v544_v41  ;;  %v1860_v43 = vsel %vm590_vm0, %v581_v40, -inf }
 0x17a   :  { %619 = vst [vmem:[#allocation13 + $0x60] sm:$0xff] %v1860_v43  ;;  %663 = vmax.xlane.f32.xlu0 %v1860_v43 }
 0x17b   :  { %v575_v44 = vmax.f32 %v545_v42, 0.0  ;;  %v2006_v42 = vld [vmem:[#allocation3 + $0x58] sm:$0xff] }
 0x17c   :  { %v561_v45 = vpop.f32.mrf.mxu3 }
 0x17d   :  { %v562_v46 = vadd.f32 %v1777_v59, %v561_v45  ;;  %v1870_v47 = vsel %vm590_vm0, %v575_v44, -inf }
 0x17e   :  { %649 = vmax.xlane.f32.xlu2 %v1850_v39  ;;  %613 = vst [vmem:[#allocation13 + $0x30] sm:$0xff] %v1870_v47 }
 0x17f   :  { %v582_v48 = vmax.f32 %v562_v46, 0.0  ;;  %v2011_v46 = vld [vmem:[#allocation3 + $0x60] sm:$0xff] }
 0x180   :  { %v546_v49 = vpop.f32.mrf.mxu1 }
 0x181   :  { %v547_v50 = vadd.f32 %v1777_v59, %v546_v49  ;;  %v1880_v51 = vsel %vm590_vm0, %v582_v48, -inf }
 0x182   :  { %620 = vst [vmem:[#allocation13 + $0x68] sm:$0xff] %v1880_v51  ;;  %665 = vmax.xlane.f32.xlu1 %v1880_v51  ;;  %651 = vmax.xlane.f32.xlu0 %v1870_v47 }
 0x183   :  { %v576_v52 = vmax.f32 %v547_v50, 0.0 }
 0x184   :  { %v564_v53 = vpop.f32.mrf.mxu3 }
 0x185   :  { %v565_v54 = vadd.f32 %v1777_v59, %v564_v53  ;;  %v1891_v55 = vsel %vm590_vm0, %v576_v52, -inf  ;;  %v2021_v52 = vld [vmem:[#allocation3 + $0x28] sm:$0xff] }
 0x186   :  { %614 = vst [vmem:[#allocation13 + $0x38] sm:$0xff] %v1891_v55 }
 0x187   :  { %v583_v56 = vmax.f32 %v565_v54, 0.0 }
 0x189   :  { %v1898_v57 = vsel %vm590_vm0, %v583_v56, -inf }
 0x18a   :  { %621 = vst [vmem:[#allocation13 + $0x70] sm:$0xff] %v1898_v57  ;;  %667 = vmax.xlane.f32.xlu2 %v1898_v57  ;;  %653 = vmax.xlane.f32.xlu1 %v1891_v55 }
 0x18c   :  { %v566_v58 = vpop.f32.mrf.mxu3 }
 0x18d   :  { %v567_v60 = vadd.f32 %v1777_v59, %v566_v58  ;;  %v1926_v59 = vld [vmem:[#allocation3] sm:$0xff]  ;;  %v2031_v58 = vld [vmem:[#allocation3 + $0x68] sm:$0xff] }
 0x18f   :  { %v584_v61 = vmax.f32 %v567_v60, 0.0  ;;  %v2033_v60 = vld [vmem:[#allocation3 + $0x30] sm:$0xff] }
 0x191   :  { %v1906_v62 = vsel %vm590_vm0, %v584_v61, -inf }
 0x192   :  { %622 = vst [vmem:[#allocation13 + $0x78] sm:$0xff] %v1906_v62  ;;  %669 = vmax.xlane.f32.xlu0 %v1906_v62 }
 0x193   :  { %1167 = dma.vmem_to_hbm [thread:$0]  %s1160_s27, 2048, %s1162_s25, [#allocation7], %s1686_s9, %s1686_s9, %s1687_s10  }
 0x1c1   :  { %v640_v25 = vpop.xlane.xlu0 %639 }
 0x1c2   :  { %v1929_v2 = vmax.f32 %v1926_v59, %v640_v25 }
 0x1c4   :  { %v703_v3 = vsub.f32 %v1926_v59, %v1929_v2  ;;  %960 = vst.msk [vmem:[#allocation3] sm:$0xff] %vm355_vm1, %v1929_v2  ;;  %769 = vperm.xlu1 %1430, %v1929_v2  }
 0x1c9   :  { %v642_v6 = vpop.xlane.xlu0 %641 }
 0x1ca   :  { %v1939_v7 = vmax.f32 %v1936_v4, %v642_v6 }
 0x1cc   :  { %v704_v10 = vsub.f32 %v1936_v4, %v1939_v7  ;;  %961 = vst.msk [vmem:[#allocation3 + $0x8] sm:$0xff] %vm355_vm1, %v1939_v7  ;;  %774 = vperm.xlu2 %1431, %v1939_v7   ;;  %v687_v7 = vld [vmem:[#allocation4] sm:$0xff] }
 0x1cd   :  { %v656_v11 = vpop.xlane.xlu2 %655 }
 0x1ce   :  { %v1949_v12 = vmax.f32 %v1941_v8, %v656_v11 }
 0x1d0   :  { %968 = vst.msk [vmem:[#allocation3 + $0x40] sm:$0xff] %vm355_vm1, %v1949_v12  ;;  %809 = vperm.xlu1 %1430, %v1949_v12  }
 0x1d1   :  { %v644_v16 = vpop.xlane.xlu1 %643 }
 0x1d2   :  { %v1959_v18 = vmax.f32 %v1951_v14, %v644_v16 }
 0x1d4   :  { %962 = vst.msk [vmem:[#allocation3 + $0x10] sm:$0xff] %vm355_vm1, %v1959_v18  ;;  %779 = vperm.xlu0 %1432, %v1959_v18  }
 0x1d5   :  { %v658_v22 = vpop.xlane.xlu0 %657 }
 0x1d6   :  { %v1969_v23 = vmax.f32 %v1961_v19, %v658_v22  ;;  %v2055_v22 = vld [vmem:[#allocation3 + $0x70] sm:$0xff] }
 0x1d8   :  { %969 = vst.msk [vmem:[#allocation3 + $0x48] sm:$0xff] %vm355_vm1, %v1969_v23 }
 0x1d9   :  { %v646_v28 = vpop.xlane.xlu1 %645 }
 0x1da   :  { %v1978_v29 = vmax.f32 %v1971_v24, %v646_v28  ;;  %v2057_v28 = vld [vmem:[#allocation3 + $0x38] sm:$0xff] }
 0x1dc   :  { %963 = vst.msk [vmem:[#allocation3 + $0x18] sm:$0xff] %vm355_vm1, %v1978_v29  ;;  %784 = vperm.xlu2 %1431, %v1978_v29   ;;  %814 = vperm.xlu0 %1432, %v1969_v23  }
 0x1e1   :  { %v648_v35 = vpop.xlane.xlu2 %647  ;;  %v660_v36 = vpop.xlane.xlu1 %659 }
 0x1e2   :  { %v1991_v37 = vmax.f32 %v1986_v32, %v648_v35  ;;  %v1994_v38 = vmax.f32 %v1988_v33, %v660_v36 }
 0x1e4   :  { %964 = vst.msk [vmem:[#allocation3 + $0x20] sm:$0xff] %vm355_vm1, %v1991_v37  ;;  %v713_v41 = vsub.f32 %v1988_v33, %v1994_v38  ;;  %789 = vperm.xlu1 %1430, %v1991_v37   ;;  %819 = vperm.xlu2 %1431, %v1994_v38  }
 0x1e5   :  { %970 = vst.msk [vmem:[#allocation3 + $0x50] sm:$0xff] %vm355_vm1, %v1994_v38  ;;  %v980_v38 = vld [vmem:[#allocation3 + $0x8] sm:$0xff] }
 0x1e9   :  { %v662_v44 = vpop.xlane.xlu2 %661 }
 0x1ea   :  { %v2009_v45 = vmax.f32 %v2006_v42, %v662_v44 }
 0x1ec   :  { %971 = vst.msk [vmem:[#allocation3 + $0x58] sm:$0xff] %vm355_vm1, %v2009_v45  ;;  %824 = vperm.xlu1 %1430, %v2009_v45  }
 0x1ed   :  { %v664_v49 = vpop.xlane.xlu0 %663 }
 0x1ee   :  { %v2019_v50 = vmax.f32 %v2011_v46, %v664_v49 }
 0x1f0   :  { %972 = vst.msk [vmem:[#allocation3 + $0x60] sm:$0xff] %vm355_vm1, %v2019_v50  ;;  %829 = vperm.xlu0 %1432, %v2019_v50  }
 0x1f1   :  { %v650_v54 = vpop.xlane.xlu2 %649 }
 0x1f2   :  { %v2029_v56 = vmax.f32 %v2021_v52, %v650_v54 }
 0x1f4   :  { %965 = vst.msk [vmem:[#allocation3 + $0x28] sm:$0xff] %vm355_vm1, %v2029_v56  ;;  %794 = vperm.xlu2 %1431, %v2029_v56  }
 0x1f5   :  { %v666_v0 = vpop.xlane.xlu1 %665  ;;  %v652_v1 = vpop.xlane.xlu0 %651 }
 0x1f6   :  { %v2041_v25 = vmax.f32 %v2031_v58, %v666_v0  ;;  %v2044_v6 = vmax.f32 %v2033_v60, %v652_v1  ;;  %v2075_v1 = vld [vmem:[#allocation3 + $0x78] sm:$0xff] }
 0x1f8   :  { %973 = vst.msk [vmem:[#allocation3 + $0x68] sm:$0xff] %vm355_vm1, %v2041_v25  ;;  %799 = vperm.xlu1 %1430, %v2044_v6  }
 0x1f9   :  { %966 = vst.msk [vmem:[#allocation3 + $0x30] sm:$0xff] %vm355_vm1, %v2044_v6 }
 0x1fc   :  { %834 = vperm.xlu2 %1431, %v2041_v25  }
 0x1fd   :  { %v668_v35 = vpop.xlane.xlu2 %667  ;;  %v654_v36 = vpop.xlane.xlu1 %653 }
 0x1fe   :  { %v2061_v44 = vmax.f32 %v2055_v22, %v668_v35  ;;  %v2064_v49 = vmax.f32 %v2057_v28, %v654_v36 }
 0x200   :  { %974 = vst.msk [vmem:[#allocation3 + $0x70] sm:$0xff] %vm355_vm1, %v2061_v44  ;;  %839 = vperm.xlu1 %1430, %v2061_v44  }
 0x201   :  { %967 = vst.msk [vmem:[#allocation3 + $0x38] sm:$0xff] %vm355_vm1, %v2064_v49 }
 0x204   :  { %804 = vperm.xlu2 %1431, %v2064_v49  }
 0x205   :  { %v670_v35 = vpop.xlane.xlu0 %669 }
 0x206   :  { %v2079_v36 = vmax.f32 %v2075_v1, %v670_v35 }
 0x208   :  { %975 = vst.msk [vmem:[#allocation3 + $0x78] sm:$0xff] %vm355_vm1, %v2079_v36  ;;  %844 = vperm.xlu0 %1432, %v2079_v36  }
 0x226   :  { %v775_v16 = vpop.permute.xlu2 %774 }
 0x227   :  { %v848_v0 = vsub.f32 %v1793_v5, %v775_v16 }
 0x229   :  { %v865_v61 = vmul.f32 1.442695, %v848_v0 }
 0x22b   :  { %1435 = vpow2.f32 %v865_v61 }
 0x231   :  { %v1436_v53 = vpop.eup %1435 }
 0x232   :  { %897 = vadd.xlane.f32.xlu1 %v1436_v53 }
 0x236   :  { %v770_v11 = vpop.permute.xlu1 %769  ;;  %v785_v48 = vpop.permute.xlu2 %784 }
 0x237   :  { %v847_v35 = vsub.f32 %v1785_v63, %v770_v11  ;;  %v850_v53 = vsub.f32 %v1821_v21, %v785_v48 }
 0x239   :  { %v863_v40 = vmul.f32 1.442695, %v847_v35 }
 0x23b   :  { %1437 = vpow2.f32 %v863_v40  ;;  %v869_v40 = vmul.f32 1.442695, %v850_v53 }
 0x23e   :  { %v820_v27 = vpop.permute.xlu2 %819 }
 0x23f   :  { %v857_v54 = vsub.f32 %v1828_v26, %v820_v27 }
 0x241   :  { %v1438_v31 = vpop.eup %1437  ;;  %v883_v20 = vmul.f32 1.442695, %v857_v54 }
 0x242   :  { %v810_v15 = vpop.permute.xlu1 %809  ;;  %895 = vadd.xlane.f32.xlu2 %v1438_v31 }
 0x243   :  { %1439 = vpow2.f32 %v883_v20  ;;  %v855_v5 = vsub.f32 %v1800_v9, %v810_v15 }
 0x245   :  { %v879_v16 = vmul.f32 1.442695, %v855_v5 }
 0x246   :  { %v780_v61 = vpop.permute.xlu0 %779 }
 0x247   :  { %1441 = vpow2.f32 %v879_v16  ;;  %v849_v0 = vsub.f32 %v1807_v13, %v780_v61 }
 0x249   :  { %v1440_v63 = vpop.eup %1439  ;;  %v867_v11 = vmul.f32 1.442695, %v849_v0 }
 0x24a   :  { %915 = vadd.xlane.f32.xlu1 %v1440_v63 }
 0x24b   :  { %1443 = vpow2.f32 %v867_v11 }
 0x24c   :  { %1445 = vpow2.f32 %v869_v40 }
 0x24d   :  { %v1442_v26 = vpop.eup %1441 }
 0x24e   :  { %911 = vadd.xlane.f32.xlu2 %v1442_v26  ;;  %v795_v27 = vpop.permute.xlu2 %794  ;;  %v815_v54 = vpop.permute.xlu0 %814 }
 0x24f   :  { %v856_v20 = vsub.f32 %v1814_v17, %v815_v54  ;;  %v852_v40 = vsub.f32 %v1850_v39, %v795_v27 }
 0x251   :  { %v1444_v9 = vpop.eup %1443  ;;  %v881_v15 = vmul.f32 1.442695, %v856_v20  ;;  %v873_v20 = vmul.f32 1.442695, %v852_v40 }
 0x252   :  { %899 = vadd.xlane.f32.xlu0 %v1444_v9  ;;  %v1446_v21 = vpop.eup %1445 }
 0x253   :  { %1447 = vpow2.f32 %v881_v15 }
 0x256   :  { %v790_v31 = vpop.permute.xlu1 %789  ;;  %901 = vadd.xlane.f32.xlu2 %v1446_v21  ;;  %v835_v13 = vpop.permute.xlu2 %834 }
 0x257   :  { %v851_v48 = vsub.f32 %v1834_v30, %v790_v31  ;;  %v860_v16 = vsub.f32 %v1880_v51, %v835_v13 }
 0x259   :  { %v871_v35 = vmul.f32 1.442695, %v851_v48  ;;  %v1448_v5 = vpop.eup %1447  ;;  %v889_v61 = vmul.f32 1.442695, %v860_v16 }
 0x25a   :  { %913 = vadd.xlane.f32.xlu0 %v1448_v5 }
 0x25b   :  { %1449 = vpow2.f32 %v871_v35 }
 0x25c   :  { %1451 = vpow2.f32 %v889_v61 }
 0x25e   :  { %v825_v53 = vpop.permute.xlu1 %824  ;;  %v805_v0 = vpop.permute.xlu2 %804 }
 0x25f   :  { %v858_v17 = vsub.f32 %v1842_v34, %v825_v53  ;;  %v854_v30 = vsub.f32 %v1891_v55, %v805_v0  ;;  %v721_v0 = vmul.f32 1.442695, %v704_v10  ;;  %v2186_v10 = vsub.f32 %v1941_v8, %v1949_v12 }
 0x260   :  { %v2188_v8 = vsub.f32 %v1971_v24, %v1978_v29  ;;  %v689_v24 = vld [vmem:[#allocation4 + $0x10] sm:$0xff] }
 0x261   :  { %v1450_v63 = vpop.eup %1449  ;;  %v885_v11 = vmul.f32 1.442695, %v858_v17  ;;  %v877_v9 = vmul.f32 1.442695, %v854_v30  ;;  %v739_v30 = vmul.f32 1.442695, %v713_v41 }
 0x262   :  { %903 = vadd.xlane.f32.xlu1 %v1450_v63  ;;  %v830_v26 = vpop.permute.xlu0 %829  ;;  %v1452_v15 = vpop.eup %1451  ;;  %v725_v12 = vmul.f32 1.442695, %v2188_v8  ;;  %v2194_v8 = vsub.f32 %v2021_v52, %v2029_v56 }
 0x263   :  { %1453 = vpow2.f32 %v885_v11  ;;  %v859_v54 = vsub.f32 %v1860_v43, %v830_v26 }
 0x265   :  { %v887_v51 = vmul.f32 1.442695, %v859_v54 }
 0x267   :  { %1455 = vpow2.f32 %v887_v51  ;;  %v735_v51 = vmul.f32 1.442695, %v2186_v10 }
 0x268   :  { %1457 = vpow2.f32 %v873_v20 }
 0x269   :  { %v1454_v21 = vpop.eup %1453  ;;  %1459 = vpow2.f32 %v877_v9 }
 0x26a   :  { %917 = vadd.xlane.f32.xlu2 %v1454_v21  ;;  %921 = vadd.xlane.f32.xlu1 %v1452_v15  ;;  %v800_v34 = vpop.permute.xlu1 %799 }
 0x26b   :  { %v853_v39 = vsub.f32 %v1870_v47, %v800_v34  ;;  %v697_v34 = vld [vmem:[#allocation4 + $0x50] sm:$0xff] }
 0x26d   :  { %v1456_v27 = vpop.eup %1455  ;;  %v875_v31 = vmul.f32 1.442695, %v853_v39 }
 0x26e   :  { %919 = vadd.xlane.f32.xlu0 %v1456_v27  ;;  %v1458_v55 = vpop.eup %1457 }
 0x26f   :  { %1461 = vpow2.f32 %v875_v31  ;;  %v1460_v13 = vpop.eup %1459 }
 0x272   :  { %905 = vadd.xlane.f32.xlu2 %v1458_v55  ;;  %909 = vadd.xlane.f32.xlu1 %v1460_v13  ;;  %v840_v43 = vpop.permute.xlu1 %839  ;;  %v695_v55 = vld [vmem:[#allocation4 + $0x40] sm:$0xff] }
 0x273   :  { %v861_v48 = vsub.f32 %v1898_v57, %v840_v43  ;;  %v688_v57 = vld [vmem:[#allocation4 + $0x8] sm:$0xff] }
 0x275   :  { %v1462_v35 = vpop.eup %1461  ;;  %v891_v5 = vmul.f32 1.442695, %v861_v48 }
 0x276   :  { %907 = vadd.xlane.f32.xlu0 %v1462_v35 }
 0x277   :  { %1463 = vpow2.f32 %v891_v5 }
 0x27a   :  { %v845_v16 = vpop.permute.xlu0 %844 }
 0x27b   :  { %v862_v61 = vsub.f32 %v1906_v62, %v845_v16  ;;  %v719_v62 = vmul.f32 1.442695, %v703_v3  ;;  %v2187_v3 = vsub.f32 %v1951_v14, %v1959_v18  ;;  %v2189_v18 = vsub.f32 %v1961_v19, %v1969_v23 }
 0x27c   :  { %v2190_v19 = vsub.f32 %v1986_v32, %v1991_v37  ;;  %v2191_v32 = vsub.f32 %v2006_v42, %v2009_v45 }
 0x27d   :  { %v1464_v53 = vpop.eup %1463  ;;  %v893_v47 = vmul.f32 1.442695, %v862_v61  ;;  %v723_v15 = vmul.f32 1.442695, %v2187_v3  ;;  %v737_v43 = vmul.f32 1.442695, %v2189_v18 }
 0x27e   :  { %923 = vadd.xlane.f32.xlu2 %v1464_v53  ;;  %v727_v23 = vmul.f32 1.442695, %v2190_v19  ;;  %v741_v37 = vmul.f32 1.442695, %v2191_v32  ;;  %v691_v3 = vld [vmem:[#allocation4 + $0x20] sm:$0xff]  ;;  %v2197_v32 = vsub.f32 %v2055_v22, %v2061_v44 }
 0x27f   :  { %1465 = vpow2.f32 %v893_v47  ;;  %v690_v47 = vld [vmem:[#allocation4 + $0x18] sm:$0xff]  ;;  %v983_v44 = vld [vmem:[#allocation3 + $0x20] sm:$0xff] }
 0x280   :  { %1467 = vpow2.f32 %v721_v0 }
 0x281   :  { %1469 = vpow2.f32 %v719_v62 }
 0x285   :  { %v1466_v17 = vpop.eup %1465 }
 0x286   :  { %925 = vadd.xlane.f32.xlu0 %v1466_v17  ;;  %v1468_v63 = vpop.eup %1467 }
 0x287   :  { %v752_v11 = vmul.f32 %v1468_v63, %v688_v57  ;;  %v1470_v4 = vpop.eup %1469 }
 0x288   :  { %v751_v20 = vmul.f32 %v1470_v4, %v687_v7 }
 0x2a5   :  { %v898_v40 = vpop.xlane.xlu1 %897 }
 0x2a6   :  { %v928_v26 = vadd.f32 %v898_v40, %v752_v11  ;;  %v979_v11 = vld [vmem:[#allocation3] sm:$0xff] }
 0x2a8   :  { %945 = vst.msk [vmem:[#allocation4 + $0x8] sm:$0xff] %vm355_vm1, %v928_v26 }
 0x2af   :  { %v996_v54 = vld [vmem:[#allocation4 + $0x8] sm:$0xff] }
 0x2b0   :  { %1471 = vlog2.f32 %v996_v54  ;;  %v696_v54 = vld [vmem:[#allocation4 + $0x48] sm:$0xff] }
 0x2b1   :  { %1473 = vpow2.f32 %v739_v30 }
 0x2b2   :  { %1475 = vpow2.f32 %v735_v51  ;;  %v2192_v51 = vsub.f32 %v2031_v58, %v2041_v25 }
 0x2b3   :  { %1477 = vpow2.f32 %v723_v15 }
 0x2b4   :  { %1479 = vpow2.f32 %v725_v12  ;;  %v729_v12 = vmul.f32 1.442695, %v2194_v8  ;;  %v2198_v8 = vsub.f32 %v2075_v1, %v2079_v36 }
 0x2b5   :  { %v896_v9 = vpop.xlane.xlu2 %895 }
 0x2b6   :  { %v1472_v59 = vpop.eup %1471  ;;  %v927_v2 = vadd.f32 %v896_v9, %v751_v20  ;;  %v745_v20 = vmul.f32 1.442695, %v2192_v51 }
 0x2b7   :  { %v1014_v33 = vmul.f32 0.6931472, %v1472_v59  ;;  %v1474_v41 = vpop.eup %1473 }
 0x2b8   :  { %944 = vst.msk [vmem:[#allocation4] sm:$0xff] %vm355_vm1, %v927_v2  ;;  %v761_v39 = vmul.f32 %v1474_v41, %v697_v34  ;;  %v1476_v27 = vpop.eup %1475 }
 0x2b9   :  { %v1044_v21 = vadd.f32 %v1014_v33, %v980_v38  ;;  %v759_v48 = vmul.f32 %v1476_v27, %v695_v55  ;;  %v1478_v35 = vpop.eup %1477  ;;  %v2193_v38 = vsub.f32 %v2011_v46, %v2019_v50  ;;  %v2195_v27 = vsub.f32 %v2057_v28, %v2064_v49  ;;  %v981_v55 = vld [vmem:[#allocation3 + $0x10] sm:$0xff] }
 0x2ba   :  { %v753_v16 = vmul.f32 %v1478_v35, %v689_v24  ;;  %v1480_v61 = vpop.eup %1479  ;;  %v2196_v35 = vsub.f32 %v2033_v60, %v2044_v6  ;;  %v989_v6 = vld [vmem:[#allocation3 + $0x50] sm:$0xff] }
 0x2bb   :  { %1066 = vperm.xlu2 %1431, %v1044_v21   ;;  %v754_v57 = vmul.f32 %v1480_v61, %v690_v47  ;;  %v743_v42 = vmul.f32 1.442695, %v2193_v38  ;;  %v987_v21 = vld [vmem:[#allocation3 + $0x40] sm:$0xff] }
 0x2bc   :  { %v731_v28 = vmul.f32 1.442695, %v2196_v35  ;;  %v699_v61 = vld [vmem:[#allocation4 + $0x60] sm:$0xff] }
 0x2bd   :  { %v916_v31 = vpop.xlane.xlu1 %915 }
 0x2be   :  { %v937_v13 = vadd.f32 %v916_v31, %v761_v39  ;;  %v733_v31 = vmul.f32 1.442695, %v2195_v27 }
 0x2bf   :  { %v995_v14 = vld [vmem:[#allocation4] sm:$0xff] }
 0x2c0   :  { %954 = vst.msk [vmem:[#allocation4 + $0x50] sm:$0xff] %vm355_vm1, %v937_v13  ;;  %1481 = vlog2.f32 %v995_v14 }
 0x2c1   :  { %v912_v5 = vpop.xlane.xlu2 %911  ;;  %1483 = vpow2.f32 %v737_v43  ;;  %v698_v43 = vld [vmem:[#allocation4 + $0x58] sm:$0xff] }
 0x2c2   :  { %v935_v29 = vadd.f32 %v912_v5, %v759_v48  ;;  %1485 = vpow2.f32 %v727_v23  ;;  %v700_v48 = vld [vmem:[#allocation4 + $0x68] sm:$0xff] }
 0x2c4   :  { %952 = vst.msk [vmem:[#allocation4 + $0x40] sm:$0xff] %vm355_vm1, %v935_v29 }
 0x2c5   :  { %v900_v53 = vpop.xlane.xlu0 %899 }
 0x2c6   :  { %v1482_v17 = vpop.eup %1481  ;;  %v929_v0 = vadd.f32 %v900_v53, %v753_v16 }
 0x2c7   :  { %v1012_v63 = vmul.f32 0.6931472, %v1482_v17  ;;  %v1484_v62 = vpop.eup %1483  ;;  %v1005_v15 = vld [vmem:[#allocation4 + $0x50] sm:$0xff] }
 0x2c8   :  { %946 = vst.msk [vmem:[#allocation4 + $0x10] sm:$0xff] %vm355_vm1, %v929_v0  ;;  %v760_v7 = vmul.f32 %v1484_v62, %v696_v54  ;;  %v1486_v2 = vpop.eup %1485  ;;  %v692_v62 = vld [vmem:[#allocation4 + $0x28] sm:$0xff] }
 0x2c9   :  { %v902_v40 = vpop.xlane.xlu2 %901  ;;  %v1043_v26 = vadd.f32 %v1012_v63, %v979_v11  ;;  %v755_v41 = vmul.f32 %v1486_v2, %v691_v3  ;;  %v693_v2 = vld [vmem:[#allocation4 + $0x30] sm:$0xff] }
 0x2ca   :  { %v930_v30 = vadd.f32 %v902_v40, %v754_v57 }
 0x2cb   :  { %1061 = vperm.xlu1 %1430, %v1043_v26   ;;  %v1003_v4 = vld [vmem:[#allocation4 + $0x40] sm:$0xff]  ;;  %v988_v26 = vld [vmem:[#allocation3 + $0x48] sm:$0xff] }
 0x2cc   :  { %947 = vst.msk [vmem:[#allocation4 + $0x18] sm:$0xff] %vm355_vm1, %v930_v30  ;;  %1487 = vlog2.f32 %v1003_v4  ;;  %v694_v30 = vld [vmem:[#allocation4 + $0x38] sm:$0xff] }
 0x2cd   :  { %v914_v10 = vpop.xlane.xlu0 %913 }
 0x2ce   :  { %v936_v9 = vadd.f32 %v914_v10, %v760_v7 }
 0x2cf   :  { %v997_v59 = vld [vmem:[#allocation4 + $0x10] sm:$0xff] }
 0x2d0   :  { %1489 = vlog2.f32 %v997_v59  ;;  %953 = vst.msk [vmem:[#allocation4 + $0x48] sm:$0xff] %vm355_vm1, %v936_v9 }
 0x2d1   :  { %1491 = vpow2.f32 %v741_v37  ;;  %v747_v37 = vmul.f32 1.442695, %v2197_v32 }
 0x2d2   :  { %v1488_v33 = vpop.eup %1487  ;;  %1493 = vpow2.f32 %v745_v20 }
 0x2d3   :  { %v1028_v45 = vmul.f32 0.6931472, %v1488_v33  ;;  %1495 = vlog2.f32 %v1005_v15  ;;  %v998_v56 = vld [vmem:[#allocation4 + $0x18] sm:$0xff] }
 0x2d4   :  { %1497 = vpow2.f32 %v743_v42 }
 0x2d5   :  { %v904_v58 = vpop.xlane.xlu1 %903  ;;  %v1051_v25 = vadd.f32 %v1028_v45, %v987_v21 }
 0x2d6   :  { %v1490_v34 = vpop.eup %1489  ;;  %v931_v39 = vadd.f32 %v904_v58, %v755_v41  ;;  %v982_v58 = vld [vmem:[#allocation3 + $0x18] sm:$0xff] }
 0x2d7   :  { %1101 = vperm.xlu2 %1431, %v1051_v25   ;;  %v1016_v46 = vmul.f32 0.6931472, %v1490_v34  ;;  %v1492_v50 = vpop.eup %1491  ;;  %v1004_v13 = vld [vmem:[#allocation4 + $0x48] sm:$0xff] }
 0x2d8   :  { %948 = vst.msk [vmem:[#allocation4 + $0x20] sm:$0xff] %vm355_vm1, %v931_v39  ;;  %v1494_v14 = vpop.eup %1493  ;;  %1499 = vlog2.f32 %v1004_v13  ;;  %v762_v49 = vmul.f32 %v1492_v50, %v698_v43 }
 0x2d9   :  { %v1045_v18 = vadd.f32 %v1016_v46, %v981_v55  ;;  %v1496_v52 = vpop.eup %1495  ;;  %1501 = vpow2.f32 %v729_v12  ;;  %v764_v5 = vmul.f32 %v1494_v14, %v700_v48  ;;  %v749_v12 = vmul.f32 1.442695, %v2198_v8  ;;  %v990_v14 = vld [vmem:[#allocation3 + $0x58] sm:$0xff] }
 0x2da   :  { %1503 = vpow2.f32 %v733_v31  ;;  %v1498_v24 = vpop.eup %1497  ;;  %v1032_v53 = vmul.f32 0.6931472, %v1496_v52  ;;  %v701_v31 = vld [vmem:[#allocation4 + $0x70] sm:$0xff] }
 0x2db   :  { %1071 = vperm.xlu0 %1432, %v1045_v18   ;;  %1505 = vlog2.f32 %v998_v56  ;;  %v763_v60 = vmul.f32 %v1498_v24, %v699_v61  ;;  %v702_v24 = vld [vmem:[#allocation4 + $0x78] sm:$0xff] }
 0x2dc   :  { %1507 = vpow2.f32 %v731_v28  ;;  %v1053_v40 = vadd.f32 %v1032_v53, %v989_v6  ;;  %v991_v28 = vld [vmem:[#allocation3 + $0x60] sm:$0xff] }
 0x2dd   :  { %v918_v29 = vpop.xlane.xlu2 %917  ;;  %v922_v16 = vpop.xlane.xlu1 %921 }
 0x2de   :  { %v938_v47 = vadd.f32 %v918_v29, %v762_v49  ;;  %v940_v17 = vadd.f32 %v922_v16, %v764_v5  ;;  %v1500_v0 = vpop.eup %1499 }
 0x2df   :  { %v999_v19 = vld [vmem:[#allocation4 + $0x20] sm:$0xff]  ;;  %v1502_v23 = vpop.eup %1501  ;;  %v1030_v63 = vmul.f32 0.6931472, %v1500_v0 }
 0x2e0   :  { %955 = vst.msk [vmem:[#allocation4 + $0x58] sm:$0xff] %vm355_vm1, %v938_v47  ;;  %1509 = vlog2.f32 %v999_v19  ;;  %v1504_v57 = vpop.eup %1503  ;;  %v756_v10 = vmul.f32 %v1502_v23, %v692_v62  ;;  %v984_v47 = vld [vmem:[#allocation3 + $0x28] sm:$0xff]  ;;  %v986_v23 = vld [vmem:[#allocation3 + $0x38] sm:$0xff] }
 0x2e1   :  { %957 = vst.msk [vmem:[#allocation4 + $0x68] sm:$0xff] %vm355_vm1, %v940_v17  ;;  %v920_v11 = vpop.xlane.xlu0 %919  ;;  %v1052_v4 = vadd.f32 %v1030_v63, %v988_v26  ;;  %v1506_v7 = vpop.eup %1505  ;;  %v758_v51 = vmul.f32 %v1504_v57, %v694_v30  ;;  %1511 = vpow2.f32 %v747_v37  ;;  %v985_v26 = vld [vmem:[#allocation3 + $0x30] sm:$0xff] }
 0x2e2   :  { %v939_v54 = vadd.f32 %v920_v11, %v763_v60  ;;  %v1508_v20 = vpop.eup %1507  ;;  %v1018_v38 = vmul.f32 0.6931472, %v1506_v7 }
 0x2e3   :  { %1111 = vperm.xlu0 %1432, %v1053_v40   ;;  %1106 = vperm.xlu1 %1430, %v1052_v4   ;;  %v757_v22 = vmul.f32 %v1508_v20, %v693_v2 }
 0x2e4   :  { %956 = vst.msk [vmem:[#allocation4 + $0x60] sm:$0xff] %vm355_vm1, %v939_v54  ;;  %v1046_v34 = vadd.f32 %v1018_v38, %v982_v58  ;;  %v992_v54 = vld [vmem:[#allocation3 + $0x68] sm:$0xff] }
 0x2e5   :  { %v906_v9 = vpop.xlane.xlu2 %905  ;;  %v910_v59 = vpop.xlane.xlu1 %909 }
 0x2e6   :  { %v1510_v3 = vpop.eup %1509  ;;  %v932_v15 = vadd.f32 %v906_v9, %v756_v10  ;;  %v934_v33 = vadd.f32 %v910_v59, %v758_v51  ;;  %v993_v10 = vld [vmem:[#allocation3 + $0x70] sm:$0xff]  ;;  %v994_v59 = vld [vmem:[#allocation3 + $0x78] sm:$0xff] }
 0x2e7   :  { %v1020_v42 = vmul.f32 0.6931472, %v1510_v3  ;;  %v1006_v45 = vld [vmem:[#allocation4 + $0x58] sm:$0xff]  ;;  %v1512_v27 = vpop.eup %1511 }
 0x2e8   :  { %949 = vst.msk [vmem:[#allocation4 + $0x28] sm:$0xff] %vm355_vm1, %v932_v15  ;;  %1513 = vlog2.f32 %v1006_v45  ;;  %v765_v13 = vmul.f32 %v1512_v27, %v701_v31  ;;  %v1008_v52 = vld [vmem:[#allocation4 + $0x68] sm:$0xff] }
 0x2e9   :  { %951 = vst.msk [vmem:[#allocation4 + $0x38] sm:$0xff] %vm355_vm1, %v934_v33  ;;  %v908_v41 = vpop.xlane.xlu0 %907  ;;  %v1047_v21 = vadd.f32 %v1020_v42, %v983_v44 }
 0x2ea   :  { %v933_v25 = vadd.f32 %v908_v41, %v757_v22 }
 0x2eb   :  { %1081 = vperm.xlu0 %1432, %v1047_v21   ;;  %v1007_v39 = vld [vmem:[#allocation4 + $0x60] sm:$0xff]  ;;  %1076 = vperm.xlu1 %1430, %v1046_v34  }
 0x2ec   :  { %950 = vst.msk [vmem:[#allocation4 + $0x30] sm:$0xff] %vm355_vm1, %v933_v25  ;;  %1515 = vlog2.f32 %v1007_v39 }
 0x2ed   :  { %1517 = vpow2.f32 %v749_v12 }
 0x2ee   :  { %v1514_v46 = vpop.eup %1513 }
 0x2ef   :  { %v1034_v50 = vmul.f32 0.6931472, %v1514_v46  ;;  %v1000_v55 = vld [vmem:[#allocation4 + $0x28] sm:$0xff] }
 0x2f0   :  { %1519 = vlog2.f32 %v1000_v55  ;;  %v1002_v18 = vld [vmem:[#allocation4 + $0x38] sm:$0xff] }
 0x2f1   :  { %v924_v43 = vpop.xlane.xlu2 %923  ;;  %v1054_v48 = vadd.f32 %v1034_v50, %v990_v14  ;;  %1521 = vlog2.f32 %v1002_v18 }
 0x2f2   :  { %v1516_v1 = vpop.eup %1515  ;;  %v941_v36 = vadd.f32 %v924_v43, %v765_v13 }
 0x2f3   :  { %1116 = vperm.xlu2 %1431, %v1054_v48   ;;  %v1036_v56 = vmul.f32 0.6931472, %v1516_v1  ;;  %v1001_v35 = vld [vmem:[#allocation4 + $0x30] sm:$0xff]  ;;  %v1518_v49 = vpop.eup %1517 }
 0x2f4   :  { %958 = vst.msk [vmem:[#allocation4 + $0x70] sm:$0xff] %vm355_vm1, %v941_v36  ;;  %1523 = vlog2.f32 %v1001_v35  ;;  %v766_v53 = vmul.f32 %v1518_v49, %v702_v24 }
 0x2f5   :  { %v1055_v5 = vadd.f32 %v1036_v56, %v991_v28  ;;  %1525 = vlog2.f32 %v1008_v52 }
 0x2f6   :  { %v1520_v29 = vpop.eup %1519 }
 0x2f7   :  { %v1522_v16 = vpop.eup %1521  ;;  %1121 = vperm.xlu1 %1430, %v1055_v5   ;;  %v1022_v61 = vmul.f32 0.6931472, %v1520_v29 }
 0x2f8   :  { %v1026_v17 = vmul.f32 0.6931472, %v1522_v16 }
 0x2f9   :  { %v926_v0 = vpop.xlane.xlu0 %925  ;;  %v1048_v19 = vadd.f32 %v1022_v61, %v984_v47 }
 0x2fa   :  { %v1524_v60 = vpop.eup %1523  ;;  %v942_v6 = vadd.f32 %v926_v0, %v766_v53  ;;  %v1050_v63 = vadd.f32 %v1026_v17, %v986_v23 }
 0x2fb   :  { %v1526_v57 = vpop.eup %1525  ;;  %1086 = vperm.xlu2 %1431, %v1048_v19   ;;  %v1024_v11 = vmul.f32 0.6931472, %v1524_v60  ;;  %v1009_v40 = vld [vmem:[#allocation4 + $0x70] sm:$0xff] }
 0x2fc   :  { %959 = vst.msk [vmem:[#allocation4 + $0x78] sm:$0xff] %vm355_vm1, %v942_v6  ;;  %1096 = vperm.xlu0 %1432, %v1050_v63   ;;  %1527 = vlog2.f32 %v1009_v40  ;;  %v1038_v30 = vmul.f32 0.6931472, %v1526_v57 }
 0x2fd   :  { %v1049_v62 = vadd.f32 %v1024_v11, %v985_v26 }
 0x2fe   :  { %v1056_v7 = vadd.f32 %v1038_v30, %v992_v54 }
 0x2ff   :  { %1091 = vperm.xlu1 %1430, %v1049_v62  }
 0x302   :  { %v1528_v4 = vpop.eup %1527 }
 0x303   :  { %v1040_v32 = vmul.f32 0.6931472, %v1528_v4  ;;  %v1010_v37 = vld [vmem:[#allocation4 + $0x78] sm:$0xff] }
 0x304   :  { %1126 = vperm.xlu0 %1432, %v1056_v7   ;;  %1529 = vlog2.f32 %v1010_v37 }
 0x305   :  { %v1057_v51 = vadd.f32 %v1040_v32, %v993_v10 }
 0x307   :  { %1131 = vperm.xlu2 %1431, %v1057_v51  }
 0x30a   :  { %v1530_v20 = vpop.eup %1529 }
 0x30b   :  { %v1042_v9 = vmul.f32 0.6931472, %v1530_v20 }
 0x30d   :  { %v1058_v2 = vadd.f32 %v1042_v9, %v994_v59 }
 0x30f   :  { %1136 = vperm.xlu1 %1430, %v1058_v2  }
 0x315   :  { %v1067_v3 = vpop.permute.xlu2 %1066 }
 0x316   :  { %1140 = vst [vmem:[#allocation14 + $0x8] sm:$0xff] %v1067_v3 }
 0x331   :  { %v1102_v15 = vpop.permute.xlu2 %1101 }
 0x332   :  { %1147 = vst [vmem:[#allocation14 + $0x40] sm:$0xff] %v1102_v15 }
 0x33d   :  { %v1062_v33 = vpop.permute.xlu1 %1061 }
 0x33e   :  { %1139 = vst [vmem:[#allocation14] sm:$0xff] %v1062_v33 }
 0x34d   :  { %v1117_v38 = vpop.permute.xlu2 %1116  ;;  %v1072_v42 = vpop.permute.xlu0 %1071 }
 0x34e   :  { %1150 = vst [vmem:[#allocation14 + $0x58] sm:$0xff] %v1117_v38 }
 0x34f   :  { %1141 = vst [vmem:[#allocation14 + $0x10] sm:$0xff] %v1072_v42 }
 0x355   :  { %v1087_v45 = vpop.permute.xlu2 %1086  ;;  %v1112_v22 = vpop.permute.xlu0 %1111 }
 0x356   :  { %1144 = vst [vmem:[#allocation14 + $0x28] sm:$0xff] %v1087_v45  ;;  %v1107_v44 = vpop.permute.xlu1 %1106 }
 0x357   :  { %1148 = vst [vmem:[#allocation14 + $0x48] sm:$0xff] %v1107_v44 }
 0x358   :  { %1149 = vst [vmem:[#allocation14 + $0x50] sm:$0xff] %v1112_v22 }
 0x35d   :  { %v1082_v41 = vpop.permute.xlu0 %1081 }
 0x35e   :  { %v1077_v21 = vpop.permute.xlu1 %1076  ;;  %1143 = vst [vmem:[#allocation14 + $0x20] sm:$0xff] %v1082_v41 }
 0x35f   :  { %1142 = vst [vmem:[#allocation14 + $0x18] sm:$0xff] %v1077_v21 }
 0x361   :  { %v1132_v58 = vpop.permute.xlu2 %1131 }
 0x362   :  { %1153 = vst [vmem:[#allocation14 + $0x70] sm:$0xff] %v1132_v58 }
 0x369   :  { %v1122_v25 = vpop.permute.xlu1 %1121 }
 0x36a   :  { %1151 = vst [vmem:[#allocation14 + $0x60] sm:$0xff] %v1122_v25 }
 0x36e   :  { %v1097_v34 = vpop.permute.xlu0 %1096 }
 0x36f   :  { %1146 = vst [vmem:[#allocation14 + $0x38] sm:$0xff] %v1097_v34 }
 0x371   :  { %v1092_v8 = vpop.permute.xlu1 %1091 }
 0x372   :  { %1145 = vst [vmem:[#allocation14 + $0x30] sm:$0xff] %v1092_v8 }
 0x376   :  { %v1127_v12 = vpop.permute.xlu0 %1126 }
 0x377   :  { %1152 = vst [vmem:[#allocation14 + $0x68] sm:$0xff] %v1127_v12 }
 0x381   :  { %v1137_v39 = vpop.permute.xlu1 %1136 }
 0x382   :  { %1154 = vst [vmem:[#allocation14 + $0x78] sm:$0xff] %v1137_v39 }
 0x383   :  { %1180 = dma.vmem_to_hbm [thread:$0]  %s1173_s28, 2048, %s1175_s8, [#allocation15], %s1686_s9, %s1686_s9, %s1687_s10  }
 0x384   :  { %1681 = dma.done.wait [#allocation7], 2048  }
 0x385   :  { %1682 = vsyncadd [#allocation7], 4294965248 }
 0x386   :  { %1683 = dma.done.wait [#allocation15], 2048  }
 0x387   :  { %1684 = vsyncadd [#allocation15], 4294965248 }
 0x388   :  { %1189 = vsyncpa [#allocation6], 1 }
 0x389   :  { %1190 = vsyncpa [#allocation9], 1 }
 0x38a   :  { %1191 = vsyncpa [#allocation12], 1 }
 0x38b   :  { %1192 = vsyncpa [#allocation7], 1 }
 0x38c   :  { %1193 = vsyncpa [#allocation15], 1 }

</bundles_post_ra>
